<compile_context>
chip_gen: v7x
topology: tpu7x:2x2x1
jax: 0.10.0
libtpu: 0.0.40
codegen_flags: <defaults>
</compile_context>

<pallas_src>
import jax
import jax.numpy as jnp
from jax.experimental import pallas as pl
from jax.experimental.pallas import tpu as pltpu


# ------------------- fused conv3x3 + bias + relu + maxpool2x2 ----------------

def _conv_relu_pool_kernel(p_ref, w_ref, b_ref, o_ref):
    # p_ref: (1, 4, M, K) bf16 im2col patches, one slab per 2x2 pool quadrant,
    #        rows ordered (image-in-chunk, h2, w2), K = 9*Cin.
    # w_ref: (K, Cout) bf16    b_ref: (1, Cout) f32    o_ref: (1, M, Cout) f32
    w = w_ref[...]
    s = jnp.dot(p_ref[0, 0], w, preferred_element_type=jnp.float32)
    for q in range(1, 4):                     # max over the 4 pool positions
        s = jnp.maximum(s, jnp.dot(p_ref[0, q], w,
                                   preferred_element_type=jnp.float32))
    # relu(max_q s_q + b) == maxpool(relu(conv + b)): bias constant, relu monotone
    o_ref[0] = jnp.maximum(s + b_ref[...], 0.0)


def _pick_tb(B):
    """Images per grid step: batch them for MXU/DMA efficiency but keep >=2
    chunks when possible so both v7x TensorCores get work."""
    if B >= 16:
        return 8
    if B >= 4:
        return B // 2
    return 1


def conv3x3_relu_pool(x_nhwc, w, b):
    """Fused 3x3 'same' conv (stride 1, pad 1) + bias + ReLU + 2x2/2 maxpool.
    x_nhwc: (B,H,W,Cin), w: (3,3,Cin,Cout) HWIO, b: (Cout,) -> (B,H//2,W//2,Cout)."""
    B, H, W, Cin = x_nhwc.shape
    Cout = w.shape[-1]
    assert H % 2 == 0 and W % 2 == 0, "maxpool 2x2 needs even spatial dims"
    H2, W2 = H // 2, W // 2

    tb = _pick_tb(B)
    Bp = ((B + tb - 1) // tb) * tb
    if Bp != B:                                   # pad batch to a chunk multiple
        x_nhwc = jnp.pad(x_nhwc, ((0, Bp - B), (0, 0), (0, 0), (0, 0)))
    nchunks = Bp // tb
    M = tb * H2 * W2
    K = 9 * Cin

    xp = jnp.pad(x_nhwc, ((0, 0), (1, 1), (1, 1), (0, 0)))
    # im2col with the 9 taps folded into the contraction dim (bf16 halves HBM bytes)
    patches = jnp.concatenate(
        [xp[:, ky:ky + H, kx:kx + W, :] for ky in range(3) for kx in range(3)],
        axis=-1).astype(jnp.bfloat16)                       # (Bp, H, W, 9*Cin)
    # one row-slab per 2x2 pool quadrant; rows within a chunk ordered (t, h2, w2)
    quads = jnp.stack(
        [patches[:, hy::2, wx::2, :].reshape(nchunks, M, K)
         for hy in range(2) for wx in range(2)], axis=1)    # (nchunks, 4, M, K)

    wk = w.reshape(K, Cout).astype(jnp.bfloat16)
    b2 = b.reshape(1, Cout).astype(jnp.float32)

    out = pl.pallas_call(
        _conv_relu_pool_kernel,
        out_shape=jax.ShapeDtypeStruct((nchunks, M, Cout), jnp.float32),
        grid_spec=pltpu.PrefetchScalarGridSpec(
            num_scalar_prefetch=0,
            grid=(nchunks,),
            in_specs=[
                pl.BlockSpec((1, 4, M, K), lambda i: (i, 0, 0, 0)),
                pl.BlockSpec((K, Cout), lambda i: (0, 0)),
                pl.BlockSpec((1, Cout), lambda i: (0, 0)),
            ],
            out_specs=pl.BlockSpec((1, M, Cout), lambda i: (i, 0, 0)),
        ),
        compiler_params=pltpu.CompilerParams(
            dimension_semantics=("parallel",)),
    )(quads, wk, b2)

    out = out.reshape(Bp, H2, W2, Cout)
    return out[:B]


# ----------------------------------- fc -------------------------------------

def _fc_kernel(x_ref, w_ref, b_ref, o_ref):
    o_ref[...] = jnp.dot(x_ref[...], w_ref[...],
                         preferred_element_type=jnp.float32) + b_ref[...]


def linear(x, w, b):
    """x: (B,K), w: (K,N), b: (N,) -> (B,N); matmul inputs in bf16, f32 accumulate."""
    B, K = x.shape
    N = w.shape[1]
    return pl.pallas_call(
        _fc_kernel,
        out_shape=jax.ShapeDtypeStruct((B, N), jnp.float32),
        grid_spec=pltpu.PrefetchScalarGridSpec(
            num_scalar_prefetch=0,
            grid=(1,),
            in_specs=[
                pl.BlockSpec((B, K), lambda i: (0, 0)),
                pl.BlockSpec((K, N), lambda i: (0, 0)),
                pl.BlockSpec((1, N), lambda i: (0, 0)),
            ],
            out_specs=pl.BlockSpec((B, N), lambda i: (0, 0)),
        ),
    )(x.astype(jnp.bfloat16), w.astype(jnp.bfloat16),
      b.reshape(1, N).astype(jnp.float32))


# --------------------------------- forward ----------------------------------

def cnn_forward(x_nchw, params):
    x = jnp.transpose(x_nchw, (0, 2, 3, 1)).astype(jnp.float32)   # NCHW -> NHWC
    x = conv3x3_relu_pool(x, params["w1"], params["b1"])          # (B,14,14,32)
    x = conv3x3_relu_pool(x, params["w2"], params["b2"])          # (B,7,7,64)
    B = x.shape[0]
    # NHWC flatten; wfc_hwc was pre-permuted at init so no runtime transpose is
    # needed to match PyTorch's x.view(B,-1) on an NCHW tensor.
    x = x.reshape(B, -1)                                          # (B, 7*7*64)
    return linear(x, params["wfc_hwc"], params["bfc"])            # (B, num_classes)


def init_params(key, num_classes):
    k1, k2, k3 = jax.random.split(key, 3)
    # conv weights stored HWIO (3,3,Cin,Cout); deterministic synthetic init
    w1 = jax.random.normal(k1, (3, 3, 3, 32), jnp.float32) * 0.10
    b1 = jnp.full((32,), 0.01, jnp.float32)
    w2 = jax.random.normal(k2, (3, 3, 32, 64), jnp.float32) * 0.05
    b2 = jnp.full((64,), 0.01, jnp.float32)
    # fc weight in PyTorch layout: rows indexed (c, h, w) == x.view(B,-1) on NCHW
    wfc = jax.random.normal(k3, (64 * 7 * 7, num_classes), jnp.float32) * 0.02
    bfc = jnp.zeros((num_classes,), jnp.float32)
    # pre-permute once to NHWC-flatten order (rows indexed (h, w, c)) so the
    # forward never transposes the activation before fc1
    wfc_hwc = (wfc.reshape(64, 7, 7, num_classes)
                  .transpose(1, 2, 0, 3)
                  .reshape(64 * 7 * 7, num_classes))
    return dict(w1=w1, b1=b1, w2=w2, b2=b2, wfc=wfc, wfc_hwc=wfc_hwc, bfc=bfc)


# pure-JAX f32 reference of the same forward pass, for a numerical sanity check
def cnn_forward_ref(x_nchw, params):
    x = jnp.transpose(x_nchw, (0, 2, 3, 1)).astype(jnp.float32)

    def conv(x, w, b):
        y = jax.lax.conv_general_dilated(
            x, w, window_strides=(1, 1), padding="SAME",
            dimension_numbers=("NHWC", "HWIO", "NHWC"))
        return jnp.maximum(y + b, 0.0)

    def pool(x):
        return jax.lax.reduce_window(
            x, -jnp.inf, jax.lax.max,
            window_dimensions=(1, 2, 2, 1), window_strides=(1, 2, 2, 1),
            padding="VALID")

    x = pool(conv(x, params["w1"], params["b1"]))
    x = pool(conv(x, params["w2"], params["b2"]))
    B = x.shape[0]
    x = jnp.transpose(x, (0, 3, 1, 2)).reshape(B, -1)   # PyTorch NCHW flatten
    return x @ params["wfc"] + params["bfc"]


if __name__ == "__main__":
    num_classes = 9
    key = jax.random.PRNGKey(0)
    kx, kp = jax.random.split(key)
    # fc1 expects 64*7*7 features => input spatial size must be 28x28
    x = jax.random.normal(kx, (2, 3, 28, 28), jnp.float32)
    params = init_params(kp, num_classes)

    out = jax.jit(cnn_forward)(x, params)
    out = jax.block_until_ready(out)

    ref = jax.block_until_ready(cnn_forward_ref(x, params))
    assert out.shape == (2, num_classes), out.shape
    # bf16 matmul inputs with f32 accumulation: comfortably within 5e-2 tolerance
    assert jnp.allclose(out, ref, rtol=5e-2, atol=5e-2), \
        f"max abs diff {jnp.max(jnp.abs(out - ref))}"
    print("KERNEL_OK")
</pallas_src>

<mosaic_0001>
module attributes {stable_mosaic.version = 11 : i64} {
  func.func @_conv_relu_pool_kernel(%arg0: i32, %arg1: memref<1x4x196x27xbf16, #tpu.memory_space<vmem>>, %arg2: memref<27x32xbf16, #tpu.memory_space<vmem>>, %arg3: memref<1x32xf32, #tpu.memory_space<vmem>>, %arg4: memref<1x196x32xf32, #tpu.memory_space<vmem>>) attributes {dimension_semantics = [#tpu.dimension_semantics<parallel>], iteration_bounds = array<i64: 2>, scalar_prefetch = 0 : i64, scratch_operands = 0 : i64, tpu.core_type = #tpu.core_type<tc>, window_params = [{transform_indices = @transform_0, window_bounds = array<i64: 1, 4, 196, 27>}, {pipeline_mode = #tpu.pipeline_mode<synchronous>, transform_indices = @transform_1, window_bounds = array<i64: 27, 32>}, {pipeline_mode = #tpu.pipeline_mode<synchronous>, transform_indices = @transform_2, window_bounds = array<i64: 1, 32>}, {transform_indices = @transform_3, window_bounds = array<i64: 1, 196, 32>}]} {
    %c0 = arith.constant 0 : index
    %c0_0 = arith.constant 0 : index
    %0 = vector.load %arg2[%c0, %c0_0] : memref<27x32xbf16, #tpu.memory_space<vmem>>, vector<27x32xbf16>
    %c0_1 = arith.constant 0 : index
    %c0_2 = arith.constant 0 : index
    %c0_3 = arith.constant 0 : index
    %c0_4 = arith.constant 0 : index
    %1 = vector.load %arg1[%c0_1, %c0_2, %c0_3, %c0_4] : memref<1x4x196x27xbf16, #tpu.memory_space<vmem>>, vector<1x1x196x27xbf16>
    %2 = vector.shape_cast %1 : vector<1x1x196x27xbf16> to vector<196x27xbf16>
    %cst = arith.constant dense<0.000000e+00> : vector<196x32xf32>
    %3 = tpu.matmul %2, %0, %cst {dimension_numbers = #tpu.dot_dimension_numbers<[1], [0], [0], [1], [0, 0, 1, 1], [], []>} : vector<196x27xbf16>, vector<27x32xbf16>, vector<196x32xf32> -> vector<196x32xf32>
    %c0_5 = arith.constant 0 : index
    %c1 = arith.constant 1 : index
    %c0_6 = arith.constant 0 : index
    %c0_7 = arith.constant 0 : index
    %4 = vector.load %arg1[%c0_5, %c1, %c0_6, %c0_7] : memref<1x4x196x27xbf16, #tpu.memory_space<vmem>>, vector<1x1x196x27xbf16>
    %5 = vector.shape_cast %4 : vector<1x1x196x27xbf16> to vector<196x27xbf16>
    %cst_8 = arith.constant dense<0.000000e+00> : vector<196x32xf32>
    %6 = tpu.matmul %5, %0, %cst_8 {dimension_numbers = #tpu.dot_dimension_numbers<[1], [0], [0], [1], [0, 0, 1, 1], [], []>} : vector<196x27xbf16>, vector<27x32xbf16>, vector<196x32xf32> -> vector<196x32xf32>
    %7 = arith.maximumf %3, %6 : vector<196x32xf32>
    %c0_9 = arith.constant 0 : index
    %c2 = arith.constant 2 : index
    %c0_10 = arith.constant 0 : index
    %c0_11 = arith.constant 0 : index
    %8 = vector.load %arg1[%c0_9, %c2, %c0_10, %c0_11] : memref<1x4x196x27xbf16, #tpu.memory_space<vmem>>, vector<1x1x196x27xbf16>
    %9 = vector.shape_cast %8 : vector<1x1x196x27xbf16> to vector<196x27xbf16>
    %cst_12 = arith.constant dense<0.000000e+00> : vector<196x32xf32>
    %10 = tpu.matmul %9, %0, %cst_12 {dimension_numbers = #tpu.dot_dimension_numbers<[1], [0], [0], [1], [0, 0, 1, 1], [], []>} : vector<196x27xbf16>, vector<27x32xbf16>, vector<196x32xf32> -> vector<196x32xf32>
    %11 = arith.maximumf %7, %10 : vector<196x32xf32>
    %c0_13 = arith.constant 0 : index
    %c3 = arith.constant 3 : index
    %c0_14 = arith.constant 0 : index
    %c0_15 = arith.constant 0 : index
    %12 = vector.load %arg1[%c0_13, %c3, %c0_14, %c0_15] : memref<1x4x196x27xbf16, #tpu.memory_space<vmem>>, vector<1x1x196x27xbf16>
    %13 = vector.shape_cast %12 : vector<1x1x196x27xbf16> to vector<196x27xbf16>
    %cst_16 = arith.constant dense<0.000000e+00> : vector<196x32xf32>
    %14 = tpu.matmul %13, %0, %cst_16 {dimension_numbers = #tpu.dot_dimension_numbers<[1], [0], [0], [1], [0, 0, 1, 1], [], []>} : vector<196x27xbf16>, vector<27x32xbf16>, vector<196x32xf32> -> vector<196x32xf32>
    %15 = arith.maximumf %11, %14 : vector<196x32xf32>
    %c0_17 = arith.constant 0 : index
    %c0_18 = arith.constant 0 : index
    %16 = vector.load %arg3[%c0_17, %c0_18] : memref<1x32xf32, #tpu.memory_space<vmem>>, vector<1x32xf32>
    %17 = vector.broadcast %16 : vector<1x32xf32> to vector<196x32xf32>
    %18 = arith.addf %15, %17 : vector<196x32xf32>
    %cst_19 = arith.constant 0.000000e+00 : f32
    %19 = vector.broadcast %cst_19 : f32 to vector<196x32xf32>
    %20 = arith.maximumf %18, %19 : vector<196x32xf32>
    %c0_20 = arith.constant 0 : index
    %c0_21 = arith.constant 0 : index
    %c0_22 = arith.constant 0 : index
    %21 = vector.load %arg4[%c0_20, %c0_21, %c0_22] : memref<1x196x32xf32, #tpu.memory_space<vmem>>, vector<1x196x32xf32>
    %22 = vector.shape_cast %21 : vector<1x196x32xf32> to vector<196x32xf32>
    %23 = vector.shape_cast %20 : vector<196x32xf32> to vector<1x196x32xf32>
    tpu.vector_store %arg4[%c0_20, %c0_21, %c0_22], %23 {strides = array<i32>} : memref<1x196x32xf32, #tpu.memory_space<vmem>>, vector<1x196x32xf32>,
    return
  }
  func.func @transform_0(%arg0: i32) -> (i32, i32, i32, i32) {
    %c0_i32 = arith.constant 0 : i32
    %c0_i32_0 = arith.constant 0 : i32
    %c0_i32_1 = arith.constant 0 : i32
    %c0_i32_2 = arith.constant 0 : i32
    return %arg0, %c0_i32, %c0_i32_0, %c0_i32_1 : i32, i32, i32, i32
  }
  func.func @transform_1(%arg0: i32) -> (i32, i32) {
    %c0_i32 = arith.constant 0 : i32
    %c0_i32_0 = arith.constant 0 : i32
    %c0_i32_1 = arith.constant 0 : i32
    return %c0_i32, %c0_i32_0 : i32, i32
  }
  func.func @transform_2(%arg0: i32) -> (i32, i32) {
    %c0_i32 = arith.constant 0 : i32
    %c0_i32_0 = arith.constant 0 : i32
    %c0_i32_1 = arith.constant 0 : i32
    return %c0_i32, %c0_i32_0 : i32, i32
  }
  func.func @transform_3(%arg0: i32) -> (i32, i32, i32) {
    %c0_i32 = arith.constant 0 : i32
    %c0_i32_0 = arith.constant 0 : i32
    %c0_i32_1 = arith.constant 0 : i32
    return %arg0, %c0_i32, %c0_i32_0 : i32, i32, i32
  }
}

module attributes {stable_mosaic.version = 11 : i64} {
  func.func @_conv_relu_pool_kernel(%arg0: i32, %arg1: memref<1x4x49x288xbf16, #tpu.memory_space<vmem>>, %arg2: memref<288x64xbf16, #tpu.memory_space<vmem>>, %arg3: memref<1x64xf32, #tpu.memory_space<vmem>>, %arg4: memref<1x49x64xf32, #tpu.memory_space<vmem>>) attributes {dimension_semantics = [#tpu.dimension_semantics<parallel>], iteration_bounds = array<i64: 2>, scalar_prefetch = 0 : i64, scratch_operands = 0 : i64, tpu.core_type = #tpu.core_type<tc>, window_params = [{transform_indices = @transform_0, window_bounds = array<i64: 1, 4, 49, 288>}, {pipeline_mode = #tpu.pipeline_mode<synchronous>, transform_indices = @transform_1, window_bounds = array<i64: 288, 64>}, {pipeline_mode = #tpu.pipeline_mode<synchronous>, transform_indices = @transform_2, window_bounds = array<i64: 1, 64>}, {transform_indices = @transform_3, window_bounds = array<i64: 1, 49, 64>}]} {
    %c0 = arith.constant 0 : index
    %c0_0 = arith.constant 0 : index
    %0 = vector.load %arg2[%c0, %c0_0] : memref<288x64xbf16, #tpu.memory_space<vmem>>, vector<288x64xbf16>
    %c0_1 = arith.constant 0 : index
    %c0_2 = arith.constant 0 : index
    %c0_3 = arith.constant 0 : index
    %c0_4 = arith.constant 0 : index
    %1 = vector.load %arg1[%c0_1, %c0_2, %c0_3, %c0_4] : memref<1x4x49x288xbf16, #tpu.memory_space<vmem>>, vector<1x1x49x288xbf16>
    %2 = vector.shape_cast %1 : vector<1x1x49x288xbf16> to vector<49x288xbf16>
    %cst = arith.constant dense<0.000000e+00> : vector<49x64xf32>
    %3 = tpu.matmul %2, %0, %cst {dimension_numbers = #tpu.dot_dimension_numbers<[1], [0], [0], [1], [0, 0, 1, 1], [], []>} : vector<49x288xbf16>, vector<288x64xbf16>, vector<49x64xf32> -> vector<49x64xf32>
    %c0_5 = arith.constant 0 : index
    %c1 = arith.constant 1 : index
    %c0_6 = arith.constant 0 : index
    %c0_7 = arith.constant 0 : index
    %4 = vector.load %arg1[%c0_5, %c1, %c0_6, %c0_7] : memref<1x4x49x288xbf16, #tpu.memory_space<vmem>>, vector<1x1x49x288xbf16>
    %5 = vector.shape_cast %4 : vector<1x1x49x288xbf16> to vector<49x288xbf16>
    %cst_8 = arith.constant dense<0.000000e+00> : vector<49x64xf32>
    %6 = tpu.matmul %5, %0, %cst_8 {dimension_numbers = #tpu.dot_dimension_numbers<[1], [0], [0], [1], [0, 0, 1, 1], [], []>} : vector<49x288xbf16>, vector<288x64xbf16>, vector<49x64xf32> -> vector<49x64xf32>
    %7 = arith.maximumf %3, %6 : vector<49x64xf32>
    %c0_9 = arith.constant 0 : index
    %c2 = arith.constant 2 : index
    %c0_10 = arith.constant 0 : index
    %c0_11 = arith.constant 0 : index
    %8 = vector.load %arg1[%c0_9, %c2, %c0_10, %c0_11] : memref<1x4x49x288xbf16, #tpu.memory_space<vmem>>, vector<1x1x49x288xbf16>
    %9 = vector.shape_cast %8 : vector<1x1x49x288xbf16> to vector<49x288xbf16>
    %cst_12 = arith.constant dense<0.000000e+00> : vector<49x64xf32>
    %10 = tpu.matmul %9, %0, %cst_12 {dimension_numbers = #tpu.dot_dimension_numbers<[1], [0], [0], [1], [0, 0, 1, 1], [], []>} : vector<49x288xbf16>, vector<288x64xbf16>, vector<49x64xf32> -> vector<49x64xf32>
    %11 = arith.maximumf %7, %10 : vector<49x64xf32>
    %c0_13 = arith.constant 0 : index
    %c3 = arith.constant 3 : index
    %c0_14 = arith.constant 0 : index
    %c0_15 = arith.constant 0 : index
    %12 = vector.load %arg1[%c0_13, %c3, %c0_14, %c0_15] : memref<1x4x49x288xbf16, #tpu.memory_space<vmem>>, vector<1x1x49x288xbf16>
    %13 = vector.shape_cast %12 : vector<1x1x49x288xbf16> to vector<49x288xbf16>
    %cst_16 = arith.constant dense<0.000000e+00> : vector<49x64xf32>
    %14 = tpu.matmul %13, %0, %cst_16 {dimension_numbers = #tpu.dot_dimension_numbers<[1], [0], [0], [1], [0, 0, 1, 1], [], []>} : vector<49x288xbf16>, vector<288x64xbf16>, vector<49x64xf32> -> vector<49x64xf32>
    %15 = arith.maximumf %11, %14 : vector<49x64xf32>
    %c0_17 = arith.constant 0 : index
    %c0_18 = arith.constant 0 : index
    %16 = vector.load %arg3[%c0_17, %c0_18] : memref<1x64xf32, #tpu.memory_space<vmem>>, vector<1x64xf32>
    %17 = vector.broadcast %16 : vector<1x64xf32> to vector<49x64xf32>
    %18 = arith.addf %15, %17 : vector<49x64xf32>
    %cst_19 = arith.constant 0.000000e+00 : f32
    %19 = vector.broadcast %cst_19 : f32 to vector<49x64xf32>
    %20 = arith.maximumf %18, %19 : vector<49x64xf32>
    %c0_20 = arith.constant 0 : index
    %c0_21 = arith.constant 0 : index
    %c0_22 = arith.constant 0 : index
    %21 = vector.load %arg4[%c0_20, %c0_21, %c0_22] : memref<1x49x64xf32, #tpu.memory_space<vmem>>, vector<1x49x64xf32>
    %22 = vector.shape_cast %21 : vector<1x49x64xf32> to vector<49x64xf32>
    %23 = vector.shape_cast %20 : vector<49x64xf32> to vector<1x49x64xf32>
    tpu.vector_store %arg4[%c0_20, %c0_21, %c0_22], %23 {strides = array<i32>} : memref<1x49x64xf32, #tpu.memory_space<vmem>>, vector<1x49x64xf32>,
    return
  }
  func.func @transform_0(%arg0: i32) -> (i32, i32, i32, i32) {
    %c0_i32 = arith.constant 0 : i32
    %c0_i32_0 = arith.constant 0 : i32
    %c0_i32_1 = arith.constant 0 : i32
    %c0_i32_2 = arith.constant 0 : i32
    return %arg0, %c0_i32, %c0_i32_0, %c0_i32_1 : i32, i32, i32, i32
  }
  func.func @transform_1(%arg0: i32) -> (i32, i32) {
    %c0_i32 = arith.constant 0 : i32
    %c0_i32_0 = arith.constant 0 : i32
    %c0_i32_1 = arith.constant 0 : i32
    return %c0_i32, %c0_i32_0 : i32, i32
  }
  func.func @transform_2(%arg0: i32) -> (i32, i32) {
    %c0_i32 = arith.constant 0 : i32
    %c0_i32_0 = arith.constant 0 : i32
    %c0_i32_1 = arith.constant 0 : i32
    return %c0_i32, %c0_i32_0 : i32, i32
  }
  func.func @transform_3(%arg0: i32) -> (i32, i32, i32) {
    %c0_i32 = arith.constant 0 : i32
    %c0_i32_0 = arith.constant 0 : i32
    %c0_i32_1 = arith.constant 0 : i32
    return %arg0, %c0_i32, %c0_i32_0 : i32, i32, i32
  }
}

module attributes {stable_mosaic.version = 11 : i64} {
  func.func @_fc_kernel(%arg0: i32, %arg1: memref<2x3136xbf16, #tpu.memory_space<vmem>>, %arg2: memref<3136x9xbf16, #tpu.memory_space<vmem>>, %arg3: memref<1x9xf32, #tpu.memory_space<vmem>>, %arg4: memref<2x9xf32, #tpu.memory_space<vmem>>) attributes {dimension_semantics = [#tpu.dimension_semantics<arbitrary>], iteration_bounds = array<i64: 1>, scalar_prefetch = 0 : i64, scratch_operands = 0 : i64, tpu.core_type = #tpu.core_type<tc>, window_params = [{pipeline_mode = #tpu.pipeline_mode<synchronous>, transform_indices = @transform_0, window_bounds = array<i64: 2, 3136>}, {pipeline_mode = #tpu.pipeline_mode<synchronous>, transform_indices = @transform_1, window_bounds = array<i64: 3136, 9>}, {pipeline_mode = #tpu.pipeline_mode<synchronous>, transform_indices = @transform_2, window_bounds = array<i64: 1, 9>}, {pipeline_mode = #tpu.pipeline_mode<synchronous>, transform_indices = @transform_3, window_bounds = array<i64: 2, 9>}]} {
    %c0 = arith.constant 0 : index
    %c0_0 = arith.constant 0 : index
    %0 = vector.load %arg1[%c0, %c0_0] : memref<2x3136xbf16, #tpu.memory_space<vmem>>, vector<2x3136xbf16>
    %c0_1 = arith.constant 0 : index
    %c0_2 = arith.constant 0 : index
    %1 = vector.load %arg2[%c0_1, %c0_2] : memref<3136x9xbf16, #tpu.memory_space<vmem>>, vector<3136x9xbf16>
    %cst = arith.constant dense<0.000000e+00> : vector<2x9xf32>
    %2 = tpu.matmul %0, %1, %cst {dimension_numbers = #tpu.dot_dimension_numbers<[1], [0], [0], [1], [0, 0, 1, 1], [], []>} : vector<2x3136xbf16>, vector<3136x9xbf16>, vector<2x9xf32> -> vector<2x9xf32>
    %c0_3 = arith.constant 0 : index
    %c0_4 = arith.constant 0 : index
    %3 = vector.load %arg3[%c0_3, %c0_4] : memref<1x9xf32, #tpu.memory_space<vmem>>, vector<1x9xf32>
    %4 = vector.broadcast %3 : vector<1x9xf32> to vector<2x9xf32>
    %5 = arith.addf %2, %4 : vector<2x9xf32>
    %c0_5 = arith.constant 0 : index
    %c0_6 = arith.constant 0 : index
    %6 = vector.load %arg4[%c0_5, %c0_6] : memref<2x9xf32, #tpu.memory_space<vmem>>, vector<2x9xf32>
    tpu.vector_store %arg4[%c0_5, %c0_6], %5 {strides = array<i32>} : memref<2x9xf32, #tpu.memory_space<vmem>>, vector<2x9xf32>,
    return
  }
  func.func @transform_0(%arg0: i32) -> (i32, i32) {
    %c0_i32 = arith.constant 0 : i32
    %c0_i32_0 = arith.constant 0 : i32
    %c0_i32_1 = arith.constant 0 : i32
    return %c0_i32, %c0_i32_0 : i32, i32
  }
  func.func @transform_1(%arg0: i32) -> (i32, i32) {
    %c0_i32 = arith.constant 0 : i32
    %c0_i32_0 = arith.constant 0 : i32
    %c0_i32_1 = arith.constant 0 : i32
    return %c0_i32, %c0_i32_0 : i32, i32
  }
  func.func @transform_2(%arg0: i32) -> (i32, i32) {
    %c0_i32 = arith.constant 0 : i32
    %c0_i32_0 = arith.constant 0 : i32
    %c0_i32_1 = arith.constant 0 : i32
    return %c0_i32, %c0_i32_0 : i32, i32
  }
  func.func @transform_3(%arg0: i32) -> (i32, i32) {
    %c0_i32 = arith.constant 0 : i32
    %c0_i32_0 = arith.constant 0 : i32
    %c0_i32_1 = arith.constant 0 : i32
    return %c0_i32, %c0_i32_0 : i32, i32
  }
}

</mosaic_0001>

<bundles_post_ra>
// kernel: cnn_forward.3
= control target key start
LH: loop header
LB: loop body
LE: loop exit
PB: predicated region body
PF: predicated region fallthrough
CT: control target
= control target key end

     0   :  { %s2037_s12 = smov 0   ;;  %s2588_s0 = inlined_call_operand.vmem [shape: bf16[2,4,196,27], index: 0, kind: input, shape index: {}]   ;;  %s2589_s1 = inlined_call_operand.vmem [shape: bf16[27,32], index: 1, kind: input, shape index: {}]   ;;  %s2590_s2 = inlined_call_operand.vmem [shape: f32[1,32], index: 2, kind: input, shape index: {}]   ;;  %s2591_s3 = inlined_call_operand.vmem [shape: f32[2,196,32], index: 3, kind: output, shape index: {}]  }
   0x1 LB: > { %s1464_s13 = sadd.s32 4294967295, %s2012_s12   ;;  %p1468_p0 = scmp.ge.s32.totalorder %s2012_s12, 1  ;;  %s2012_s12 = sphi %s2037_s12, %s13_s12  }
   0x2   : > { %p137_p1 = scmp.lt.s32.totalorder %s2012_s12, 3 }
   0x4   : > { %p138_p2 = pnand %p1468_p0, %p137_p1 }
   0x5   : > { %v1952_v0 = vld [vmem:[%s2589_s1] sm:$0xff] (!%p138_p2)   ;;  %v2014_v1 = vmov (!%p138_p2), 0.0   ;;  %v1953_v2 = vld [vmem:[%s2589_s1 + $0x8] sm:$0x3f] (!%p138_p2)   ;;  %vm315_vm0 = vcmask (!%p138_p2), 1044480   ;;  %vm316_vm1 = vcmask (!%p138_p2), 1045504  }
   0x6   : > { %141 = sbr.rel (%p138_p2) target bundleno = 439 (0x1b7), region = 32  ;;  %1715 = vmatprep.subr.bf16.mxu0 (!%p138_p2), %v2014_v1  ;;  %1771 = vmatprep.subr.bf16.mxu1 (!%p138_p2), %v2014_v1  ;;  %p161_p3 = scmp.lt.s32.totalorder (!%p138_p2), %s1464_s13, 1  ;;  %v2015_v3 = vmov (!%p138_p2), 65535   ;;  %vm2016_vm2 = vmmov (!%p138_p2), 0   ;;  %vm275_vm3 = vcmask (!%p138_p2), 220160   ;;  %vm1382_vm4 = vcmask (!%p138_p2), 261120  }
   0x7   : > { %1716 = vmatpush3.bf16.msra.mxu0 (!%p138_p2), %v1952_v0  ;;  %1772 = vmatpush3.bf16.msra.mxu1 (!%p138_p2), %v1952_v0  ;;  %v317_v4 = vsel (!%p138_p2), %vm315_vm0, 4294967295, %v2015_v3  ;;  %vm1407_vm5 = vcmask (!%p138_p2), 257024  }
   0x8   : > { %1717 = vmatprep.subr.bf16.mxu0 (!%p138_p2), %v2014_v1  ;;  %1773 = vmatprep.subr.bf16.mxu1 (!%p138_p2), %v2014_v1  ;;  %v318_v5 = vsel (!%p138_p2), %vm316_vm1, %v317_v4, 0 }
   0x9   : > { %1719 = vmatprep.mubr.msk.bf16.mxu0 (!%p138_p2), %vm2016_vm2, %v2014_v1  ;;  %1775 = vmatprep.mubr.msk.bf16.mxu1 (!%p138_p2), %vm2016_vm2, %v2014_v1  ;;  %v320_v6 = vand.u32 (!%p138_p2), %v1953_v2, %v318_v5 }
   0xb   : > { %1718 = vmatpush3.bf16.msra.mxu0 (!%p138_p2), %v320_v6  ;;  %1774 = vmatpush3.bf16.msra.mxu1 (!%p138_p2), %v320_v6 }
   0xc   : > { %1827 = vmatprep.subr.bf16.mxu0 (!%p138_p2), %v2014_v1  ;;  %1883 = vmatprep.subr.bf16.mxu1 (!%p138_p2), %v2014_v1 }
   0xd   : > { %s2616_s13 = smov (!%p161_p3, %s1464_s13), 1 }
   0xe   : > { %s1939_s18 = smul.u32 400, %s2616_s13 }
   0xf   : > { %s1940_s22 = smul.u32 200, %s2616_s13 }
  0x10   : > { %s2065_s21 = scalar_lea.vmem %s2588_s0, %s1939_s18 }
  0x11   : > { %v1954_v7 = vld [vmem:[%s2065_s21] sm:$0xff]   ;;  %v1956_v9 = vld [vmem:[%s2065_s21 + $0x8] sm:$0xff]   ;;  %v1958_v11 = vld [vmem:[%s2065_s21 + $0x10] sm:$0xff]   ;;  %s2441_s27 = scalar_lea.vmem %s2591_s3, %s1940_s22 }
  0x12   : > { %v1955_v8 = vld [vmem:[%s2065_s21 + $0x64] sm:$0xff]   ;;  %1720 = vmatmul.mubr.msk.bf16.vlgmr.msra.gmra.mrb[0].mxu0 %vm275_vm3, %v1954_v7  ;;  %v1957_v10 = vld [vmem:[%s2065_s21 + $0x6c] sm:$0xff]   ;;  %v1959_v12 = vld [vmem:[%s2065_s21 + $0x74] sm:$0xff]  }
  0x13   : > { %1776 = vmatmul.mubr.msk.bf16.vlgmr.msra.gmra.mrb[0].mxu1 %vm275_vm3, %v1955_v8  ;;  %1828 = vmatpush3.bf16.msra.mxu0 %v1952_v0  ;;  %v1960_v13 = vld [vmem:[%s2065_s21 + $0x18] sm:$0xff]   ;;  %v1962_v15 = vld [vmem:[%s2065_s21 + $0x20] sm:$0xff]   ;;  %v1964_v17 = vld [vmem:[%s2065_s21 + $0x28] sm:$0xff]  }
  0x14   : > { %1884 = vmatpush3.bf16.msra.mxu1 %v1952_v0  ;;  %1723 = vmatprep.mubr.msk.bf16.mxu0 %vm2016_vm2, %v2014_v1  ;;  %v1961_v14 = vld [vmem:[%s2065_s21 + $0x7c] sm:$0xff]   ;;  %v1963_v16 = vld [vmem:[%s2065_s21 + $0x84] sm:$0xff]   ;;  %v1965_v18 = vld [vmem:[%s2065_s21 + $0x8c] sm:$0xff]  }
  0x15   : > { %1779 = vmatprep.mubr.msk.bf16.mxu1 %vm2016_vm2, %v2014_v1  ;;  %1829 = vmatprep.subr.bf16.mxu0 %v2014_v1  ;;  %v1966_v19 = vld [vmem:[%s2065_s21 + $0x30] sm:$0xff]   ;;  %v1968_v21 = vld [vmem:[%s2065_s21 + $0x38] sm:$0xff]   ;;  %v1970_v23 = vld [vmem:[%s2065_s21 + $0x40] sm:$0xff]  }
  0x16   : > { %1885 = vmatprep.subr.bf16.mxu1 %v2014_v1  ;;  %v1967_v20 = vld [vmem:[%s2065_s21 + $0x94] sm:$0xff]   ;;  %v1969_v22 = vld [vmem:[%s2065_s21 + $0x9c] sm:$0xff]   ;;  %v1971_v24 = vld [vmem:[%s2065_s21 + $0xa4] sm:$0xff]  }
  0x17   : > { %1830 = vmatpush3.bf16.msra.mxu0 %v320_v6  ;;  %v1972_v25 = vld [vmem:[%s2065_s21 + $0x48] sm:$0xff]   ;;  %v1974_v27 = vld [vmem:[%s2065_s21 + $0x50] sm:$0xff]   ;;  %v1976_v29 = vld [vmem:[%s2065_s21 + $0x58] sm:$0xff]  }
  0x18   : > { %1886 = vmatpush3.bf16.msra.mxu1 %v320_v6  ;;  %v1973_v26 = vld [vmem:[%s2065_s21 + $0xac] sm:$0xff]   ;;  %v1975_v28 = vld [vmem:[%s2065_s21 + $0xb4] sm:$0xff]   ;;  %v1977_v30 = vld [vmem:[%s2065_s21 + $0xbc] sm:$0xff]  }
  0x19   : > { %v1978_v31 = vld [vmem:[%s2065_s21 + $0x60] ss:$0 sps:$4 sm:$0x33]   ;;  %v1979_v32 = vld [vmem:[%s2065_s21 + $0xc4] ss:$0 sps:$4 sm:$0x33]  }
  0x1a   : > { %1724 = vmatmul.mubr.msk.bf16.gmra.mrb[4].mxu0 %vm275_vm3, %v1956_v9  ;;  %v1980_v33 = vld [vmem:[%s2065_s21 + $0xc8] sm:$0xff]   ;;  %v1982_v35 = vld [vmem:[%s2065_s21 + $0xd0] sm:$0xff]   ;;  %v1984_v37 = vld [vmem:[%s2065_s21 + $0xd8] sm:$0xff]  }
  0x1b   : > { %1780 = vmatmul.mubr.msk.bf16.gmra.mrb[4].mxu1 %vm275_vm3, %v1957_v10  ;;  %1727 = vmatprep.mubr.msk.bf16.mxu0 %vm2016_vm2, %v2014_v1  ;;  %v1981_v34 = vld [vmem:[%s2065_s21 + $0x12c] sm:$0xff]   ;;  %v1983_v36 = vld [vmem:[%s2065_s21 + $0x134] sm:$0xff]   ;;  %v1985_v38 = vld [vmem:[%s2065_s21 + $0x13c] sm:$0xff]  }
  0x1c   : > { %1783 = vmatprep.mubr.msk.bf16.mxu1 %vm2016_vm2, %v2014_v1  ;;  %v1986_v39 = vld [vmem:[%s2065_s21 + $0xe0] sm:$0xff]   ;;  %v1988_v41 = vld [vmem:[%s2065_s21 + $0xe8] sm:$0xff]   ;;  %v1990_v43 = vld [vmem:[%s2065_s21 + $0xf0] sm:$0xff]  }
  0x1d   : > { %v1987_v40 = vld [vmem:[%s2065_s21 + $0x144] sm:$0xff]   ;;  %v1989_v42 = vld [vmem:[%s2065_s21 + $0x14c] sm:$0xff]   ;;  %v1991_v44 = vld [vmem:[%s2065_s21 + $0x154] sm:$0xff]  }
  0x1e   : > { %v1992_v45 = vld [vmem:[%s2065_s21 + $0xf8] sm:$0xff]   ;;  %v1994_v47 = vld [vmem:[%s2065_s21 + $0x100] sm:$0xff]   ;;  %v1996_v49 = vld [vmem:[%s2065_s21 + $0x108] sm:$0xff]  }
  0x1f   : > { %v1993_v46 = vld [vmem:[%s2065_s21 + $0x15c] sm:$0xff]   ;;  %v1995_v48 = vld [vmem:[%s2065_s21 + $0x164] sm:$0xff]   ;;  %v1997_v50 = vld [vmem:[%s2065_s21 + $0x16c] sm:$0xff]  }
  0x20   : > { %v1998_v51 = vld [vmem:[%s2065_s21 + $0x110] sm:$0xff]   ;;  %v2000_v53 = vld [vmem:[%s2065_s21 + $0x118] sm:$0xff]   ;;  %v2002_v55 = vld [vmem:[%s2065_s21 + $0x120] sm:$0xff]  }
  0x21   : > { %v1999_v52 = vld [vmem:[%s2065_s21 + $0x174] sm:$0xff]   ;;  %v2001_v54 = vld [vmem:[%s2065_s21 + $0x17c] sm:$0xff]   ;;  %v2003_v56 = vld [vmem:[%s2065_s21 + $0x184] sm:$0xff]  }
  0x22   : > { %1728 = vmatmul.mubr.msk.bf16.gmra.mrb[8].mxu0 %vm275_vm3, %v1958_v11  ;;  %v2004_v57 = vld [vmem:[%s2065_s21 + $0x128] ss:$0 sps:$4 sm:$0x33]   ;;  %v2005_v58 = vld [vmem:[%s2065_s21 + $0x18c] ss:$0 sps:$4 sm:$0x33]  }
  0x23   : > { %1784 = vmatmul.mubr.msk.bf16.gmra.mrb[8].mxu1 %vm275_vm3, %v1959_v12  ;;  %1731 = vmatprep.mubr.msk.bf16.mxu0 %vm2016_vm2, %v2014_v1 }
  0x24   : > { %1787 = vmatprep.mubr.msk.bf16.mxu1 %vm2016_vm2, %v2014_v1 }
  0x2a   : > { %1732 = vmatmul.mubr.msk.bf16.gmra.mrb[12].mxu0 %vm275_vm3, %v1960_v13 }
  0x2b   : > { %1788 = vmatmul.mubr.msk.bf16.gmra.mrb[12].mxu1 %vm275_vm3, %v1961_v14  ;;  %1735 = vmatprep.mubr.msk.bf16.mxu0 %vm2016_vm2, %v2014_v1 }
  0x2c   : > { %1791 = vmatprep.mubr.msk.bf16.mxu1 %vm2016_vm2, %v2014_v1 }
  0x32   : > { %1736 = vmatmul.mubr.msk.bf16.gmra.mrb[16].mxu0 %vm275_vm3, %v1962_v15 }
  0x33   : > { %1792 = vmatmul.mubr.msk.bf16.gmra.mrb[16].mxu1 %vm275_vm3, %v1963_v16  ;;  %1739 = vmatprep.mubr.msk.bf16.mxu0 %vm2016_vm2, %v2014_v1 }
  0x34   : > { %1795 = vmatprep.mubr.msk.bf16.mxu1 %vm2016_vm2, %v2014_v1 }
  0x3a   : > { %1740 = vmatmul.mubr.msk.bf16.gmra.mrb[20].mxu0 %vm275_vm3, %v1964_v17 }
  0x3b   : > { %1796 = vmatmul.mubr.msk.bf16.gmra.mrb[20].mxu1 %vm275_vm3, %v1965_v18  ;;  %1743 = vmatprep.mubr.msk.bf16.mxu0 %vm2016_vm2, %v2014_v1 }
  0x3c   : > { %1799 = vmatprep.mubr.msk.bf16.mxu1 %vm2016_vm2, %v2014_v1 }
  0x42   : > { %1744 = vmatmul.mubr.msk.bf16.gmra.mrb[24].mxu0 %vm275_vm3, %v1966_v19 }
  0x43   : > { %1800 = vmatmul.mubr.msk.bf16.gmra.mrb[24].mxu1 %vm275_vm3, %v1967_v20  ;;  %1747 = vmatprep.mubr.msk.bf16.mxu0 %vm2016_vm2, %v2014_v1 }
  0x44   : > { %1803 = vmatprep.mubr.msk.bf16.mxu1 %vm2016_vm2, %v2014_v1 }
  0x4a   : > { %1748 = vmatmul.mubr.msk.bf16.gmra.mrb[28].mxu0 %vm275_vm3, %v1968_v21 }
  0x4b   : > { %1804 = vmatmul.mubr.msk.bf16.gmra.mrb[28].mxu1 %vm275_vm3, %v1969_v22  ;;  %1751 = vmatprep.mubr.msk.bf16.mxu0 %vm2016_vm2, %v2014_v1 }
  0x4c   : > { %1807 = vmatprep.mubr.msk.bf16.mxu1 %vm2016_vm2, %v2014_v1 }
  0x52   : > { %1752 = vmatmul.mubr.msk.bf16.gmra.mrb[32].mxu0 %vm275_vm3, %v1970_v23 }
  0x53   : > { %1808 = vmatmul.mubr.msk.bf16.gmra.mrb[32].mxu1 %vm275_vm3, %v1971_v24  ;;  %1755 = vmatprep.mubr.msk.bf16.mxu0 %vm2016_vm2, %v2014_v1 }
  0x54   : > { %1811 = vmatprep.mubr.msk.bf16.mxu1 %vm2016_vm2, %v2014_v1 }
  0x5a   : > { %1756 = vmatmul.mubr.msk.bf16.gmra.mrb[36].mxu0 %vm275_vm3, %v1972_v25 }
  0x5b   : > { %1812 = vmatmul.mubr.msk.bf16.gmra.mrb[36].mxu1 %vm275_vm3, %v1973_v26  ;;  %1759 = vmatprep.mubr.msk.bf16.mxu0 %vm2016_vm2, %v2014_v1 }
  0x5c   : > { %1815 = vmatprep.mubr.msk.bf16.mxu1 %vm2016_vm2, %v2014_v1 }
  0x62   : > { %1760 = vmatmul.mubr.msk.bf16.gmra.mrb[40].mxu0 %vm275_vm3, %v1974_v27 }
  0x63   : > { %1816 = vmatmul.mubr.msk.bf16.gmra.mrb[40].mxu1 %vm275_vm3, %v1975_v28  ;;  %1763 = vmatprep.mubr.msk.bf16.mxu0 %vm2016_vm2, %v2014_v1 }
  0x64   : > { %1819 = vmatprep.mubr.msk.bf16.mxu1 %vm2016_vm2, %v2014_v1 }
  0x6a   : > { %1764 = vmatmul.mubr.msk.bf16.gmra.mrb[44].mxu0 %vm275_vm3, %v1976_v29 }
  0x6b   : > { %1820 = vmatmul.mubr.msk.bf16.gmra.mrb[44].mxu1 %vm275_vm3, %v1977_v30  ;;  %1767 = vmatprep.mubr.msk.bf16.mxu0 %vm2016_vm2, %v2014_v1 }
  0x6c   : > { %1823 = vmatprep.mubr.msk.bf16.mxu1 %vm2016_vm2, %v2014_v1 }
  0x72   : > { %1768 = vmatmul.mubr.msk.bf16.gmra.mrb[48].mxu0 %vm275_vm3, %v1978_v31 }
  0x73   : > { %1824 = vmatmul.mubr.msk.bf16.gmra.mrb[48].mxu1 %vm275_vm3, %v1979_v32  ;;  %1831 = vmatprep.mubr.msk.bf16.mxu0 %vm2016_vm2, %v2014_v1 }
  0x74   : > { %1887 = vmatprep.mubr.msk.bf16.mxu1 %vm2016_vm2, %v2014_v1 }
  0x7a   : > { %1832 = vmatmul.mubr.msk.bf16.vlgmr.msra.gmra.mrb[52].mxu0 %vm275_vm3, %v1980_v33 }
  0x7b   : > { %1888 = vmatmul.mubr.msk.bf16.vlgmr.msra.gmra.mrb[52].mxu1 %vm275_vm3, %v1981_v34  ;;  %1835 = vmatprep.mubr.msk.bf16.mxu0 %vm2016_vm2, %v2014_v1 }
  0x7c   : > { %1891 = vmatprep.mubr.msk.bf16.mxu1 %vm2016_vm2, %v2014_v1 }
  0x82   : > { %1836 = vmatmul.mubr.msk.bf16.gmra.mrb[56].mxu0 %vm275_vm3, %v1982_v35 }
  0x83   : > { %1892 = vmatmul.mubr.msk.bf16.gmra.mrb[56].mxu1 %vm275_vm3, %v1983_v36  ;;  %1839 = vmatprep.mubr.msk.bf16.mxu0 %vm2016_vm2, %v2014_v1 }
  0x84   : > { %1895 = vmatprep.mubr.msk.bf16.mxu1 %vm2016_vm2, %v2014_v1 }
  0x8a   : > { %1840 = vmatmul.mubr.msk.bf16.gmra.mrb[60].mxu0 %vm275_vm3, %v1984_v37 }
  0x8b   : > { %1896 = vmatmul.mubr.msk.bf16.gmra.mrb[60].mxu1 %vm275_vm3, %v1985_v38  ;;  %1843 = vmatprep.mubr.msk.bf16.mxu0 %vm2016_vm2, %v2014_v1 }
  0x8c   : > { %1899 = vmatprep.mubr.msk.bf16.mxu1 %vm2016_vm2, %v2014_v1 }
  0x92   : > { %1844 = vmatmul.mubr.msk.bf16.gmra.mrb[64].mxu0 %vm275_vm3, %v1986_v39 }
  0x93   : > { %1900 = vmatmul.mubr.msk.bf16.gmra.mrb[64].mxu1 %vm275_vm3, %v1987_v40  ;;  %1847 = vmatprep.mubr.msk.bf16.mxu0 %vm2016_vm2, %v2014_v1 }
  0x94   : > { %1903 = vmatprep.mubr.msk.bf16.mxu1 %vm2016_vm2, %v2014_v1 }
  0x9a   : > { %1848 = vmatmul.mubr.msk.bf16.gmra.mrb[68].mxu0 %vm275_vm3, %v1988_v41 }
  0x9b   : > { %1904 = vmatmul.mubr.msk.bf16.gmra.mrb[68].mxu1 %vm275_vm3, %v1989_v42  ;;  %1851 = vmatprep.mubr.msk.bf16.mxu0 %vm2016_vm2, %v2014_v1 }
  0x9c   : > { %1907 = vmatprep.mubr.msk.bf16.mxu1 %vm2016_vm2, %v2014_v1 }
  0xa2   : > { %1852 = vmatmul.mubr.msk.bf16.gmra.mrb[72].mxu0 %vm275_vm3, %v1990_v43 }
  0xa3   : > { %1908 = vmatmul.mubr.msk.bf16.gmra.mrb[72].mxu1 %vm275_vm3, %v1991_v44  ;;  %1855 = vmatprep.mubr.msk.bf16.mxu0 %vm2016_vm2, %v2014_v1 }
  0xa4   : > { %1911 = vmatprep.mubr.msk.bf16.mxu1 %vm2016_vm2, %v2014_v1 }
  0xaa   : > { %1856 = vmatmul.mubr.msk.bf16.gmra.mrb[76].mxu0 %vm275_vm3, %v1992_v45 }
  0xab   : > { %1912 = vmatmul.mubr.msk.bf16.gmra.mrb[76].mxu1 %vm275_vm3, %v1993_v46  ;;  %1859 = vmatprep.mubr.msk.bf16.mxu0 %vm2016_vm2, %v2014_v1 }
  0xac   : > { %1915 = vmatprep.mubr.msk.bf16.mxu1 %vm2016_vm2, %v2014_v1 }
  0xb2   : > { %1860 = vmatmul.mubr.msk.bf16.gmra.mrb[80].mxu0 %vm275_vm3, %v1994_v47 }
  0xb3   : > { %1916 = vmatmul.mubr.msk.bf16.gmra.mrb[80].mxu1 %vm275_vm3, %v1995_v48  ;;  %1863 = vmatprep.mubr.msk.bf16.mxu0 %vm2016_vm2, %v2014_v1 }
  0xb4   : > { %1919 = vmatprep.mubr.msk.bf16.mxu1 %vm2016_vm2, %v2014_v1 }
  0xba   : > { %1864 = vmatmul.mubr.msk.bf16.gmra.mrb[84].mxu0 %vm275_vm3, %v1996_v49 }
  0xbb   : > { %1920 = vmatmul.mubr.msk.bf16.gmra.mrb[84].mxu1 %vm275_vm3, %v1997_v50  ;;  %1867 = vmatprep.mubr.msk.bf16.mxu0 %vm2016_vm2, %v2014_v1 }
  0xbc   : > { %1923 = vmatprep.mubr.msk.bf16.mxu1 %vm2016_vm2, %v2014_v1 }
  0xc2   : > { %1868 = vmatmul.mubr.msk.bf16.gmra.mrb[88].mxu0 %vm275_vm3, %v1998_v51 }
  0xc3   : > { %1924 = vmatmul.mubr.msk.bf16.gmra.mrb[88].mxu1 %vm275_vm3, %v1999_v52  ;;  %1871 = vmatprep.mubr.msk.bf16.mxu0 %vm2016_vm2, %v2014_v1 }
  0xc4   : > { %1927 = vmatprep.mubr.msk.bf16.mxu1 %vm2016_vm2, %v2014_v1 }
  0xca   : > { %1872 = vmatmul.mubr.msk.bf16.gmra.mrb[92].mxu0 %vm275_vm3, %v2000_v53 }
  0xcb   : > { %1928 = vmatmul.mubr.msk.bf16.gmra.mrb[92].mxu1 %vm275_vm3, %v2001_v54  ;;  %1875 = vmatprep.mubr.msk.bf16.mxu0 %vm2016_vm2, %v2014_v1 }
  0xcc   : > { %1931 = vmatprep.mubr.msk.bf16.mxu1 %vm2016_vm2, %v2014_v1 }
  0xd2   : > { %1876 = vmatmul.mubr.msk.bf16.gmra.mrb[96].mxu0 %vm275_vm3, %v2002_v55 }
  0xd3   : > { %1932 = vmatmul.mubr.msk.bf16.gmra.mrb[96].mxu1 %vm275_vm3, %v2003_v56  ;;  %1879 = vmatprep.mubr.msk.bf16.mxu0 %vm2016_vm2, %v2014_v1 }
  0xd4   : > { %1935 = vmatprep.mubr.msk.bf16.mxu1 %vm2016_vm2, %v2014_v1 }
  0xda   : > { %1880 = vmatmul.mubr.msk.bf16.gmra.mrb[100].mxu0 %vm275_vm3, %v2004_v57 }
  0xdb   : > { %1936 = vmatmul.mubr.msk.bf16.gmra.mrb[100].mxu1 %vm275_vm3, %v2005_v58 }
  0xe5   : > { %v2275_v59 = vpop.f32.mrb[0].mxu0 }
  0xe6   : > { %v2277_v60 = vpop.f32.mrb[0].mxu1  ;;  %v1721_v61 = vpop.f32.mrb[1].mxu0 }
  0xe7   : > { %v722_v62 = vmax.f32 %v2275_v59, %v2277_v60  ;;  %v1777_v63 = vpop.f32.mrb[1].mxu1  ;;  %v2281_v0 = vpop.f32.mrb[2].mxu0 }
  0xe8   : > { %v2283_v2 = vpop.f32.mrb[2].mxu1  ;;  %v1722_v1 = vpop.f32.mrb[3].mxu0 }
  0xe9   : > { %v723_v3 = vmax.f32 %v2281_v0, %v2283_v2  ;;  %v1778_v4 = vpop.f32.mrb[3].mxu1 }
  0xed   : > { %v2287_v5 = vpop.f32.mrb[4].mxu0 }
  0xee   : > { %v2289_v6 = vpop.f32.mrb[4].mxu1  ;;  %v1725_v7 = vpop.f32.mrb[5].mxu0 }
  0xef   : > { %v1781_v9 = vpop.f32.mrb[5].mxu1  ;;  %v2293_v10 = vpop.f32.mrb[6].mxu0  ;;  %v2592_v2 = vmax.f32 %v2287_v5, %v2289_v6 }
  0xf0   : > { %v2295_v11 = vpop.f32.mrb[6].mxu1  ;;  %v1726_v12 = vpop.f32.mrb[7].mxu0 }
  0xf1   : > { %v1782_v14 = vpop.f32.mrb[7].mxu1 }
  0xf5   : > { %v2299_v15 = vpop.f32.mrb[8].mxu0 }
  0xf6   : > { %v2301_v16 = vpop.f32.mrb[8].mxu1  ;;  %v1729_v17 = vpop.f32.mrb[9].mxu0 }
  0xf7   : > { %v1785_v19 = vpop.f32.mrb[9].mxu1  ;;  %v2305_v20 = vpop.f32.mrb[10].mxu0 }
  0xf8   : > { %v2307_v21 = vpop.f32.mrb[10].mxu1  ;;  %v1730_v22 = vpop.f32.mrb[11].mxu0 }
  0xf9   : > { %v1786_v24 = vpop.f32.mrb[11].mxu1 }
  0xfd   : > { %v2311_v25 = vpop.f32.mrb[12].mxu0 }
  0xfe   : > { %v2313_v26 = vpop.f32.mrb[12].mxu1  ;;  %v1733_v27 = vpop.f32.mrb[13].mxu0 }
  0xff   : > { %v1789_v29 = vpop.f32.mrb[13].mxu1  ;;  %v2317_v30 = vpop.f32.mrb[14].mxu0 }
 0x100   : > { %v2319_v31 = vpop.f32.mrb[14].mxu1  ;;  %v1734_v32 = vpop.f32.mrb[15].mxu0 }
 0x101   : > { %v1790_v34 = vpop.f32.mrb[15].mxu1 }
 0x105   : > { %v2323_v35 = vpop.f32.mrb[16].mxu0 }
 0x106   : > { %v2325_v36 = vpop.f32.mrb[16].mxu1  ;;  %v1737_v37 = vpop.f32.mrb[17].mxu0 }
 0x107   : > { %v1793_v39 = vpop.f32.mrb[17].mxu1  ;;  %v2329_v40 = vpop.f32.mrb[18].mxu0 }
 0x108   : > { %v2331_v41 = vpop.f32.mrb[18].mxu1  ;;  %v1738_v42 = vpop.f32.mrb[19].mxu0 }
 0x109   : > { %v1794_v44 = vpop.f32.mrb[19].mxu1 }
 0x10d   : > { %v2335_v45 = vpop.f32.mrb[20].mxu0 }
 0x10e   : > { %v2337_v46 = vpop.f32.mrb[20].mxu1  ;;  %v1741_v47 = vpop.f32.mrb[21].mxu0 }
 0x10f   : > { %v1797_v49 = vpop.f32.mrb[21].mxu1  ;;  %v2341_v50 = vpop.f32.mrb[22].mxu0 }
 0x110   : > { %v2343_v51 = vpop.f32.mrb[22].mxu1  ;;  %v1742_v52 = vpop.f32.mrb[23].mxu0 }
 0x111   : > { %v1798_v54 = vpop.f32.mrb[23].mxu1 }
 0x115   : > { %v2347_v55 = vpop.f32.mrb[24].mxu0 }
 0x116   : > { %v2349_v56 = vpop.f32.mrb[24].mxu1  ;;  %v1745_v57 = vpop.f32.mrb[25].mxu0 }
 0x117   : > { %v1801_v61 = vpop.f32.mrb[25].mxu1  ;;  %v2353_v63 = vpop.f32.mrb[26].mxu0 }
 0x118   : > { %v2355_v1 = vpop.f32.mrb[26].mxu1  ;;  %v1746_v4 = vpop.f32.mrb[27].mxu0 }
 0x119   : > { %v1802_v9 = vpop.f32.mrb[27].mxu1 }
 0x11d   : > { %v2359_v12 = vpop.f32.mrb[28].mxu0 }
 0x11e   : > { %v2361_v14 = vpop.f32.mrb[28].mxu1  ;;  %v1749_v17 = vpop.f32.mrb[29].mxu0 }
 0x11f   : > { %v1805_v22 = vpop.f32.mrb[29].mxu1  ;;  %v2365_v24 = vpop.f32.mrb[30].mxu0 }
 0x120   : > { %v2367_v27 = vpop.f32.mrb[30].mxu1  ;;  %v1750_v29 = vpop.f32.mrb[31].mxu0 }
 0x121   : > { %v1806_v34 = vpop.f32.mrb[31].mxu1 }
 0x125   : > { %v2371_v37 = vpop.f32.mrb[32].mxu0 }
 0x126   : > { %v2373_v39 = vpop.f32.mrb[32].mxu1  ;;  %v1753_v42 = vpop.f32.mrb[33].mxu0 }
 0x127   : > { %v1809_v47 = vpop.f32.mrb[33].mxu1  ;;  %v2377_v49 = vpop.f32.mrb[34].mxu0 }
 0x128   : > { %v2379_v52 = vpop.f32.mrb[34].mxu1  ;;  %v1754_v54 = vpop.f32.mrb[35].mxu0 }
 0x129   : > { %v1810_v61 = vpop.f32.mrb[35].mxu1 }
 0x12d   : > { %v2383_v4 = vpop.f32.mrb[36].mxu0 }
 0x12e   : > { %v2385_v9 = vpop.f32.mrb[36].mxu1  ;;  %v1757_v17 = vpop.f32.mrb[37].mxu0 }
 0x12f   : > { %v1813_v29 = vpop.f32.mrb[37].mxu1  ;;  %v2389_v34 = vpop.f32.mrb[38].mxu0 }
 0x130   : > { %v2391_v42 = vpop.f32.mrb[38].mxu1  ;;  %v1758_v47 = vpop.f32.mrb[39].mxu0 }
 0x131   : > { %v1814_v44 = vpop.f32.mrb[39].mxu1 }
 0x135   : > { %v2395_v57 = vpop.f32.mrb[40].mxu0 }
 0x136   : > { %v2397_v61 = vpop.f32.mrb[40].mxu1  ;;  %v1761_v32 = vpop.f32.mrb[41].mxu0 }
 0x137   : > { %v1817_v19 = vpop.f32.mrb[41].mxu1  ;;  %v2401_v22 = vpop.f32.mrb[42].mxu0 }
 0x138   : > { %v2403_v29 = vpop.f32.mrb[42].mxu1  ;;  %v1762_v7 = vpop.f32.mrb[43].mxu0 }
 0x139   : > { %v1818_v58 = vpop.f32.mrb[43].mxu1 }
 0x13d   : > { %v2407_v54 = vpop.f32.mrb[44].mxu0 }
 0x13e   : > { %v2409_v44 = vpop.f32.mrb[44].mxu1  ;;  %v1765_v53 = vpop.f32.mrb[45].mxu0 }
 0x13f   : > { %v1821_v48 = vpop.f32.mrb[45].mxu1  ;;  %v2413_v17 = vpop.f32.mrb[46].mxu0 }
 0x140   : > { %v2415_v19 = vpop.f32.mrb[46].mxu1  ;;  %v1766_v43 = vpop.f32.mrb[47].mxu0 }
 0x141   : > { %v1822_v47 = vpop.f32.mrb[47].mxu1 }
 0x145   : > { %v2419_v58 = vpop.f32.mrb[48].mxu0 }
 0x146   : > { %v2421_v38 = vpop.f32.mrb[48].mxu1  ;;  %v1769_v33 = vpop.f32.mrb[49].mxu0 }
 0x147   : > { %v1825_v32 = vpop.f32.mrb[49].mxu1  ;;  %v455_v48 = vpop.f32.mrb[50].mxu0  ;;  %v2432_v33 = vld [vmem:[%s2590_s2] ss:$0 sm:$0xff] }
 0x148   : > { %v719_v28 = vpop.f32.mrb[50].mxu1  ;;  %v1770_v23 = vpop.f32.mrb[51].mxu0 }
 0x149   : > { %v1826_v18 = vpop.f32.mrb[51].mxu1 }
 0x14d   : > { %v909_v13 = vpop.f32.mrb[52].mxu0 }
 0x14e   : > { %v1011_v43 = vmax.f32 %v722_v62, %v909_v13  ;;  %v1198_v7 = vpop.f32.mrb[52].mxu1  ;;  %v1833_v47 = vpop.f32.mrb[53].mxu0 }
 0x14f   : > { %v1889_v8 = vpop.f32.mrb[53].mxu1  ;;  %v912_v53 = vpop.f32.mrb[54].mxu0 }
 0x150   : > { %v1300_v32 = vmax.f32 %v1011_v43, %v1198_v7  ;;  %v1012_v18 = vmax.f32 %v723_v3, %v912_v53  ;;  %v1201_v23 = vpop.f32.mrb[54].mxu1  ;;  %v1834_v28 = vpop.f32.mrb[55].mxu0 }
 0x151   : > { %v1890_v48 = vpop.f32.mrb[55].mxu1 }
 0x152   : > { %v1332_v59 = vadd.f32 %v2432_v33, %v1300_v32  ;;  %v1301_v60 = vmax.f32 %v1012_v18, %v1201_v23  ;;  %v2593_v18 = vmax.f32 %v2293_v10, %v2295_v11 }
 0x154   : > { %v1357_v62 = vmax.f32 %v1332_v59, 0.0  ;;  %v1333_v8 = vadd.f32 %v2432_v33, %v1301_v60 }
 0x155   : > { %v917_v13 = vpop.f32.mrb[56].mxu0 }
 0x156   : > { %1383 = vst.msk [vmem:[%s2441_s27] sm:$0xff] %vm1382_vm4, %v1357_v62  ;;  %v1358_v0 = vmax.f32 %v1333_v8, 0.0  ;;  %v1013_v3 = vmax.f32 %v2592_v2, %v917_v13  ;;  %v1206_v7 = vpop.f32.mrb[56].mxu1  ;;  %v1837_v53 = vpop.f32.mrb[57].mxu0 }
 0x157   : > { %v1893_v43 = vpop.f32.mrb[57].mxu1  ;;  %v920_v47 = vpop.f32.mrb[58].mxu0 }
 0x158   : > { %1384 = vst.msk [vmem:[%s2441_s27 + $0x8] sm:$0xff] %vm1382_vm4, %v1358_v0  ;;  %v1302_v32 = vmax.f32 %v1013_v3, %v1206_v7  ;;  %v1014_v23 = vmax.f32 %v2593_v18, %v920_v47  ;;  %v1209_v28 = vpop.f32.mrb[58].mxu1  ;;  %v1838_v48 = vpop.f32.mrb[59].mxu0  ;;  %v2594_v0 = vmax.f32 %v2299_v15, %v2301_v16  ;;  %v2595_v43 = vmax.f32 %v2305_v20, %v2307_v21 }
 0x159   : > { %v1894_v59 = vpop.f32.mrb[59].mxu1 }
 0x15a   : > { %v1334_v60 = vadd.f32 %v2432_v33, %v1302_v32  ;;  %v1303_v5 = vmax.f32 %v1014_v23, %v1209_v28 }
 0x15c   : > { %v1359_v6 = vmax.f32 %v1334_v60, 0.0  ;;  %v1335_v62 = vadd.f32 %v2432_v33, %v1303_v5  ;;  %v2596_v5 = vmax.f32 %v2311_v25, %v2313_v26 }
 0x15d   : > { %v925_v8 = vpop.f32.mrb[60].mxu0 }
 0x15e   : > { %1385 = vst.msk [vmem:[%s2441_s27 + $0x10] sm:$0xff] %vm1382_vm4, %v1359_v6  ;;  %v1360_v13 = vmax.f32 %v1335_v62, 0.0  ;;  %v1015_v2 = vmax.f32 %v2594_v0, %v925_v8  ;;  %v1214_v10 = vpop.f32.mrb[60].mxu1  ;;  %v1841_v11 = vpop.f32.mrb[61].mxu0  ;;  %v2597_v0 = vmax.f32 %v2317_v30, %v2319_v31 }
 0x15f   : > { %v1897_v3 = vpop.f32.mrb[61].mxu1  ;;  %v928_v7 = vpop.f32.mrb[62].mxu0 }
 0x160   : > { %1386 = vst.msk [vmem:[%s2441_s27 + $0x18] sm:$0xff] %vm1382_vm4, %v1360_v13  ;;  %v1304_v53 = vmax.f32 %v1015_v2, %v1214_v10  ;;  %v1016_v47 = vmax.f32 %v2595_v43, %v928_v7  ;;  %v1217_v32 = vpop.f32.mrb[62].mxu1  ;;  %v1842_v18 = vpop.f32.mrb[63].mxu0 }
 0x161   : > { %v1898_v23 = vpop.f32.mrb[63].mxu1 }
 0x162   : > { %v1336_v28 = vadd.f32 %v2432_v33, %v1304_v53  ;;  %v1305_v15 = vmax.f32 %v1016_v47, %v1217_v32  ;;  %v2598_v32 = vmax.f32 %v2323_v35, %v2325_v36 }
 0x164   : > { %v1361_v16 = vmax.f32 %v1336_v28, 0.0  ;;  %v1337_v48 = vadd.f32 %v2432_v33, %v1305_v15 }
 0x165   : > { %v933_v59 = vpop.f32.mrb[64].mxu0 }
 0x166   : > { %1387 = vst.msk [vmem:[%s2441_s27 + $0x20] sm:$0xff] %vm1382_vm4, %v1361_v16  ;;  %v1362_v60 = vmax.f32 %v1337_v48, 0.0  ;;  %v1017_v6 = vmax.f32 %v2596_v5, %v933_v59  ;;  %v1222_v20 = vpop.f32.mrb[64].mxu1  ;;  %v1845_v21 = vpop.f32.mrb[65].mxu0  ;;  %v2599_v16 = vmax.f32 %v2329_v40, %v2331_v41 }
 0x167   : > { %v1901_v62 = vpop.f32.mrb[65].mxu1  ;;  %v936_v8 = vpop.f32.mrb[66].mxu0 }
 0x168   : > { %1388 = vst.msk [vmem:[%s2441_s27 + $0x28] sm:$0xff] %vm1382_vm4, %v1362_v60  ;;  %v1306_v13 = vmax.f32 %v1017_v6, %v1222_v20  ;;  %v1018_v2 = vmax.f32 %v2597_v0, %v936_v8  ;;  %v1225_v10 = vpop.f32.mrb[66].mxu1  ;;  %v1846_v11 = vpop.f32.mrb[67].mxu0  ;;  %v2600_v8 = vmax.f32 %v2335_v45, %v2337_v46 }
 0x169   : > { %v1902_v3 = vpop.f32.mrb[67].mxu1  ;;  %v2601_v11 = vmax.f32 %v2341_v50, %v2343_v51 }
 0x16a   : > { %v1338_v7 = vadd.f32 %v2432_v33, %v1306_v13  ;;  %v1307_v25 = vmax.f32 %v1018_v2, %v1225_v10 }
 0x16c   : > { %v1363_v26 = vmax.f32 %v1338_v7, 0.0  ;;  %v1339_v53 = vadd.f32 %v2432_v33, %v1307_v25 }
 0x16d   : > { %v941_v43 = vpop.f32.mrb[68].mxu0 }
 0x16e   : > { %1389 = vst.msk [vmem:[%s2441_s27 + $0x30] sm:$0xff] %vm1382_vm4, %v1363_v26  ;;  %v1364_v47 = vmax.f32 %v1339_v53, 0.0  ;;  %v1019_v18 = vmax.f32 %v2598_v32, %v941_v43  ;;  %v1230_v30 = vpop.f32.mrb[68].mxu1  ;;  %v1849_v31 = vpop.f32.mrb[69].mxu0 }
 0x16f   : > { %v1905_v23 = vpop.f32.mrb[69].mxu1  ;;  %v944_v28 = vpop.f32.mrb[70].mxu0 }
 0x170   : > { %1390 = vst.msk [vmem:[%s2441_s27 + $0x38] sm:$0xff] %vm1382_vm4, %v1364_v47  ;;  %v1308_v15 = vmax.f32 %v1019_v18, %v1230_v30  ;;  %v1020_v48 = vmax.f32 %v2599_v16, %v944_v28  ;;  %v1233_v59 = vpop.f32.mrb[70].mxu1  ;;  %v1850_v60 = vpop.f32.mrb[71].mxu0  ;;  %v2602_v18 = vmax.f32 %v2347_v55, %v2349_v56 }
 0x171   : > { %v1906_v5 = vpop.f32.mrb[71].mxu1 }
 0x172   : > { %v1340_v6 = vadd.f32 %v2432_v33, %v1308_v15  ;;  %v1309_v35 = vmax.f32 %v1020_v48, %v1233_v59  ;;  %v2603_v15 = vmax.f32 %v2353_v63, %v2355_v1 }
 0x174   : > { %v1365_v36 = vmax.f32 %v1340_v6, 0.0  ;;  %v1341_v20 = vadd.f32 %v2432_v33, %v1309_v35 }
 0x175   : > { %v949_v21 = vpop.f32.mrb[72].mxu0 }
 0x176   : > { %1391 = vst.msk [vmem:[%s2441_s27 + $0x40] sm:$0xff] %vm1382_vm4, %v1365_v36  ;;  %v1366_v62 = vmax.f32 %v1341_v20, 0.0  ;;  %v1021_v13 = vmax.f32 %v2600_v8, %v949_v21  ;;  %v1238_v40 = vpop.f32.mrb[72].mxu1  ;;  %v1853_v41 = vpop.f32.mrb[73].mxu0  ;;  %v2604_v20 = vmax.f32 %v2359_v12, %v2361_v14 }
 0x177   : > { %v1909_v0 = vpop.f32.mrb[73].mxu1  ;;  %v952_v2 = vpop.f32.mrb[74].mxu0 }
 0x178   : > { %1392 = vst.msk [vmem:[%s2441_s27 + $0x48] sm:$0xff] %vm1382_vm4, %v1366_v62  ;;  %v1310_v10 = vmax.f32 %v1021_v13, %v1238_v40  ;;  %v1022_v3 = vmax.f32 %v2601_v11, %v952_v2  ;;  %v1241_v7 = vpop.f32.mrb[74].mxu1  ;;  %v1854_v25 = vpop.f32.mrb[75].mxu0  ;;  %v2605_v40 = vmax.f32 %v2365_v24, %v2367_v27 }
 0x179   : > { %v1910_v26 = vpop.f32.mrb[75].mxu1 }
 0x17a   : > { %v1342_v53 = vadd.f32 %v2432_v33, %v1310_v10  ;;  %v1311_v45 = vmax.f32 %v1022_v3, %v1241_v7  ;;  %v2606_v26 = vmax.f32 %v2371_v37, %v2373_v39 }
 0x17c   : > { %v1367_v46 = vmax.f32 %v1342_v53, 0.0  ;;  %v1343_v43 = vadd.f32 %v2432_v33, %v1311_v45 }
 0x17d   : > { %v957_v47 = vpop.f32.mrb[76].mxu0 }
 0x17e   : > { %1393 = vst.msk [vmem:[%s2441_s27 + $0x50] sm:$0xff] %vm1382_vm4, %v1367_v46  ;;  %v1368_v32 = vmax.f32 %v1343_v43, 0.0  ;;  %v1023_v30 = vmax.f32 %v2602_v18, %v957_v47  ;;  %v1246_v50 = vpop.f32.mrb[76].mxu1  ;;  %v1857_v51 = vpop.f32.mrb[77].mxu0  ;;  %v2607_v47 = vmax.f32 %v2377_v49, %v2379_v52 }
 0x17f   : > { %v1913_v31 = vpop.f32.mrb[77].mxu1  ;;  %v960_v23 = vpop.f32.mrb[78].mxu0 }
 0x180   : > { %1394 = vst.msk [vmem:[%s2441_s27 + $0x58] sm:$0xff] %vm1382_vm4, %v1368_v32  ;;  %v1312_v28 = vmax.f32 %v1023_v30, %v1246_v50  ;;  %v1024_v16 = vmax.f32 %v2603_v15, %v960_v23  ;;  %v1249_v48 = vpop.f32.mrb[78].mxu1  ;;  %v1858_v59 = vpop.f32.mrb[79].mxu0  ;;  %v2608_v15 = vmax.f32 %v2383_v4, %v2385_v9 }
 0x181   : > { %v1914_v60 = vpop.f32.mrb[79].mxu1 }
 0x182   : > { %v1344_v5 = vadd.f32 %v2432_v33, %v1312_v28  ;;  %v1313_v55 = vmax.f32 %v1024_v16, %v1249_v48 }
 0x184   : > { %v1369_v56 = vmax.f32 %v1344_v5, 0.0  ;;  %v1345_v6 = vadd.f32 %v2432_v33, %v1313_v55  ;;  %v2609_v5 = vmax.f32 %v2389_v34, %v2391_v42 }
 0x185   : > { %v965_v35 = vpop.f32.mrb[80].mxu0 }
 0x186   : > { %1395 = vst.msk [vmem:[%s2441_s27 + $0x60] sm:$0xff] %vm1382_vm4, %v1369_v56  ;;  %v1370_v36 = vmax.f32 %v1345_v6, 0.0  ;;  %v1025_v21 = vmax.f32 %v2604_v20, %v965_v35  ;;  %v1254_v63 = vpop.f32.mrb[80].mxu1  ;;  %v1861_v1 = vpop.f32.mrb[81].mxu0 }
 0x187   : > { %v1917_v62 = vpop.f32.mrb[81].mxu1  ;;  %v968_v8 = vpop.f32.mrb[82].mxu0  ;;  %v2610_v1 = vmax.f32 %v2395_v57, %v2397_v61 }
 0x188   : > { %1396 = vst.msk [vmem:[%s2441_s27 + $0x68] sm:$0xff] %vm1382_vm4, %v1370_v36  ;;  %v1314_v13 = vmax.f32 %v1025_v21, %v1254_v63  ;;  %v1026_v41 = vmax.f32 %v2605_v40, %v968_v8  ;;  %v1257_v0 = vpop.f32.mrb[82].mxu1  ;;  %v1862_v2 = vpop.f32.mrb[83].mxu0 }
 0x189   : > { %v1918_v10 = vpop.f32.mrb[83].mxu1 }
 0x18a   : > { %v1346_v11 = vadd.f32 %v2432_v33, %v1314_v13  ;;  %v1315_v12 = vmax.f32 %v1026_v41, %v1257_v0  ;;  %v2611_v41 = vmax.f32 %v2401_v22, %v2403_v29 }
 0x18c   : > { %v1371_v14 = vmax.f32 %v1346_v11, 0.0  ;;  %v1347_v3 = vadd.f32 %v2432_v33, %v1315_v12 }
 0x18d   : > { %v973_v7 = vpop.f32.mrb[84].mxu0 }
 0x18e   : > { %1397 = vst.msk [vmem:[%s2441_s27 + $0x70] sm:$0xff] %vm1382_vm4, %v1371_v14  ;;  %v1372_v25 = vmax.f32 %v1347_v3, 0.0  ;;  %v1027_v53 = vmax.f32 %v2606_v26, %v973_v7  ;;  %v1262_v24 = vpop.f32.mrb[84].mxu1  ;;  %v1865_v27 = vpop.f32.mrb[85].mxu0 }
 0x18f   : > { %v1921_v45 = vpop.f32.mrb[85].mxu1  ;;  %v976_v46 = vpop.f32.mrb[86].mxu0 }
 0x190   : > { %1398 = vst.msk [vmem:[%s2441_s27 + $0x78] sm:$0xff] %vm1382_vm4, %v1372_v25  ;;  %v1316_v43 = vmax.f32 %v1027_v53, %v1262_v24  ;;  %v1028_v32 = vmax.f32 %v2607_v47, %v976_v46  ;;  %v1265_v18 = vpop.f32.mrb[86].mxu1  ;;  %v1866_v30 = vpop.f32.mrb[87].mxu0  ;;  %v2612_v25 = vmax.f32 %v2407_v54, %v2409_v44  ;;  %v2613_v45 = vmax.f32 %v2413_v17, %v2415_v19 }
 0x191   : > { %v1922_v50 = vpop.f32.mrb[87].mxu1 }
 0x192   : > { %v1348_v51 = vadd.f32 %v2432_v33, %v1316_v43  ;;  %v1317_v37 = vmax.f32 %v1028_v32, %v1265_v18 }
 0x194   : > { %v1373_v39 = vmax.f32 %v1348_v51, 0.0  ;;  %v1349_v31 = vadd.f32 %v2432_v33, %v1317_v37  ;;  %v2614_v37 = vmax.f32 %v2419_v58, %v2421_v38 }
 0x195   : > { %v981_v23 = vpop.f32.mrb[88].mxu0 }
 0x196   : > { %1399 = vst.msk [vmem:[%s2441_s27 + $0x80] sm:$0xff] %vm1382_vm4, %v1373_v39  ;;  %v1374_v28 = vmax.f32 %v1349_v31, 0.0  ;;  %v1029_v16 = vmax.f32 %v2608_v15, %v981_v23  ;;  %v1270_v49 = vpop.f32.mrb[88].mxu1  ;;  %v1869_v52 = vpop.f32.mrb[89].mxu0 }
 0x197   : > { %v1925_v48 = vpop.f32.mrb[89].mxu1  ;;  %v984_v59 = vpop.f32.mrb[90].mxu0 }
 0x198   : > { %1400 = vst.msk [vmem:[%s2441_s27 + $0x88] sm:$0xff] %vm1382_vm4, %v1374_v28  ;;  %v1318_v60 = vmax.f32 %v1029_v16, %v1270_v49  ;;  %v1030_v55 = vmax.f32 %v2609_v5, %v984_v59  ;;  %v1273_v56 = vpop.f32.mrb[90].mxu1  ;;  %v1870_v6 = vpop.f32.mrb[91].mxu0 }
 0x199   : > { %v1926_v35 = vpop.f32.mrb[91].mxu1 }
 0x19a   : > { %v1350_v36 = vadd.f32 %v2432_v33, %v1318_v60  ;;  %v1319_v4 = vmax.f32 %v1030_v55, %v1273_v56 }
 0x19c   : > { %v1375_v9 = vmax.f32 %v1350_v36, 0.0  ;;  %v1351_v20 = vadd.f32 %v2432_v33, %v1319_v4 }
 0x19d   : > { %v989_v21 = vpop.f32.mrb[92].mxu0 }
 0x19e   : > { %1401 = vst.msk [vmem:[%s2441_s27 + $0x90] sm:$0xff] %vm1382_vm4, %v1375_v9  ;;  %v1376_v63 = vmax.f32 %v1351_v20, 0.0  ;;  %v1031_v62 = vmax.f32 %v2610_v1, %v989_v21  ;;  %v1278_v34 = vpop.f32.mrb[92].mxu1  ;;  %v1873_v42 = vpop.f32.mrb[93].mxu0 }
 0x19f   : > { %v1929_v8 = vpop.f32.mrb[93].mxu1  ;;  %v992_v13 = vpop.f32.mrb[94].mxu0 }
 0x1a0   : > { %1402 = vst.msk [vmem:[%s2441_s27 + $0x98] sm:$0xff] %vm1382_vm4, %v1376_v63  ;;  %v1320_v40 = vmax.f32 %v1031_v62, %v1278_v34  ;;  %v1032_v0 = vmax.f32 %v2611_v41, %v992_v13  ;;  %v1281_v2 = vpop.f32.mrb[94].mxu1  ;;  %v1874_v10 = vpop.f32.mrb[95].mxu0 }
 0x1a1   : > { %v1930_v11 = vpop.f32.mrb[95].mxu1 }
 0x1a2   : > { %v1352_v12 = vadd.f32 %v2432_v33, %v1320_v40  ;;  %v1321_v57 = vmax.f32 %v1032_v0, %v1281_v2 }
 0x1a4   : > { %v1377_v61 = vmax.f32 %v1352_v12, 0.0  ;;  %v1353_v14 = vadd.f32 %v2432_v33, %v1321_v57 }
 0x1a5   : > { %v997_v3 = vpop.f32.mrb[96].mxu0 }
 0x1a6   : > { %1403 = vst.msk [vmem:[%s2441_s27 + $0xa0] sm:$0xff] %vm1382_vm4, %v1377_v61  ;;  %v1378_v7 = vmax.f32 %v1353_v14, 0.0  ;;  %v1033_v26 = vmax.f32 %v2612_v25, %v997_v3  ;;  %v1286_v22 = vpop.f32.mrb[96].mxu1  ;;  %v1877_v29 = vpop.f32.mrb[97].mxu0 }
 0x1a7   : > { %v1933_v53 = vpop.f32.mrb[97].mxu1  ;;  %v1000_v24 = vpop.f32.mrb[98].mxu0 }
 0x1a8   : > { %1404 = vst.msk [vmem:[%s2441_s27 + $0xa8] sm:$0xff] %vm1382_vm4, %v1378_v7  ;;  %v1322_v27 = vmax.f32 %v1033_v26, %v1286_v22  ;;  %v1034_v46 = vmax.f32 %v2613_v45, %v1000_v24  ;;  %v1289_v43 = vpop.f32.mrb[98].mxu1  ;;  %v1878_v47 = vpop.f32.mrb[99].mxu0 }
 0x1a9   : > { %v1934_v32 = vpop.f32.mrb[99].mxu1 }
 0x1aa   : > { %v1354_v18 = vadd.f32 %v2432_v33, %v1322_v27  ;;  %v1323_v54 = vmax.f32 %v1034_v46, %v1289_v43 }
 0x1ac   : > { %v1379_v44 = vmax.f32 %v1354_v18, 0.0  ;;  %v1355_v30 = vadd.f32 %v2432_v33, %v1323_v54 }
 0x1ad   : > { %v1005_v50 = vpop.f32.mrb[100].mxu0 }
 0x1ae   : > { %1405 = vst.msk [vmem:[%s2441_s27 + $0xb0] sm:$0xff] %vm1382_vm4, %v1379_v44  ;;  %v1380_v51 = vmax.f32 %v1355_v30, 0.0  ;;  %v1035_v17 = vmax.f32 %v2614_v37, %v1005_v50  ;;  %v1294_v19 = vpop.f32.mrb[100].mxu1  ;;  %v1881_v39 = vpop.f32.mrb[101].mxu0 }
 0x1af   : > { %v1937_v31 = vpop.f32.mrb[101].mxu1  ;;  %v1008_v23 = vpop.f32.mrb[102].mxu0 }
 0x1b0   : > { %1406 = vst.msk [vmem:[%s2441_s27 + $0xb8] sm:$0xff] %vm1382_vm4, %v1380_v51  ;;  %v1324_v28 = vmax.f32 %v1035_v17, %v1294_v19  ;;  %v1297_v15 = vpop.f32.mrb[102].mxu1  ;;  %v1882_v16 = vpop.f32.mrb[103].mxu0 }
 0x1b1   : > { %v1938_v49 = vpop.f32.mrb[103].mxu1 }
 0x1b2   : > { %v1356_v52 = vadd.f32 %v2432_v33, %v1324_v28 }
 0x1b4   : > { %v1381_v48 = vmax.f32 %v1356_v52, 0.0 }
 0x1b6   : > { %1408 = vst.msk [vmem:[%s2441_s27 + $0xc0] sm:$0xf] %vm1407_vm5, %v1381_v48 }
 0x1b7 PF: > { %s13_s12 = sadd.s32 1, %s2012_s12  }
 0x1b8   : > { %p10_p4 = scmp.ge.s32.totalorder %s13_s12, 4  }
 0x1ba   :  { %12 = sbr.rel (!%p10_p4) target bundleno = 1 (0x1), region = 65 }

// kernel: cnn_forward.4
= control target key start
LH: loop header
LB: loop body
LE: loop exit
PB: predicated region body
PF: predicated region fallthrough
CT: control target
= control target key end

     0   :  { %s1744_s12 = smov 0   ;;  %s2048_s0 = inlined_call_operand.vmem [shape: bf16[2,4,49,288], index: 0, kind: input, shape index: {}]   ;;  %s2049_s1 = inlined_call_operand.vmem [shape: bf16[288,64], index: 1, kind: input, shape index: {}]   ;;  %s2050_s2 = inlined_call_operand.vmem [shape: f32[1,64], index: 2, kind: input, shape index: {}]   ;;  %s2051_s3 = inlined_call_operand.vmem [shape: f32[2,49,64], index: 3, kind: output, shape index: {}]  }
   0x1 LB: > { %s1262_s13 = sadd.s32 4294967295, %s1722_s12   ;;  %p1266_p0 = scmp.ge.s32.totalorder %s1722_s12, 1  ;;  %s1722_s12 = sphi %s1744_s12, %s13_s12  }
   0x2   : > { %p137_p1 = scmp.lt.s32.totalorder %s1722_s12, 3 }
   0x4   : > { %p138_p2 = pnand %p1266_p0, %p137_p1 }
   0x5   : > { %v1755_v0 = vld [vmem:[%s2049_s1 + $0x40] sm:$0xff] (!%p138_p2)   ;;  %v1767_v2 = vld [vmem:[%s2049_s1 + $0x48] sm:$0xff] (!%p138_p2)   ;;  %p161_p3 = scmp.lt.s32.totalorder (!%p138_p2), %s1262_s13, 1  ;;  %v1781_v4 = vld [vmem:[%s2049_s1 + $0x50] sm:$0xff] (!%p138_p2)   ;;  %vm385_vm0 = vcmask (!%p138_p2), 261120   ;;  %vm1198_vm1 = vcmask (!%p138_p2), 523264  }
   0x6   : > { %141 = sbr.rel (%p138_p2) target bundleno = 351 (0x15f), region = 32  ;;  %v1760_v1 = vld [vmem:[%s2049_s1] sm:$0xff] (!%p138_p2)   ;;  %1396 = vmatprep.subr.bf16.mxu0 (!%p138_p2), %v1755_v0  ;;  %1442 = vmatprep.subr.bf16.mxu1 (!%p138_p2), %v1755_v0  ;;  %v1774_v3 = vld [vmem:[%s2049_s1 + $0x8] sm:$0xff] (!%p138_p2)   ;;  %v1790_v5 = vld [vmem:[%s2049_s1 + $0x10] sm:$0xff] (!%p138_p2)   ;;  %vm1205_vm2 = vcmask (!%p138_p2), 516096  }
   0x7   : > { %1397 = vmatpush3.bf16.msra.mxu0 (!%p138_p2), %v1760_v1  ;;  %1443 = vmatpush3.bf16.msra.mxu1 (!%p138_p2), %v1760_v1  ;;  %v1797_v6 = vld [vmem:[%s2049_s1 + $0x58] sm:$0xff] (!%p138_p2)   ;;  %v1812_v8 = vld [vmem:[%s2049_s1 + $0x60] sm:$0xff] (!%p138_p2)   ;;  %v1831_v10 = vld [vmem:[%s2049_s1 + $0x68] sm:$0xff] (!%p138_p2)  }
   0x8   : > { %1398 = vmatprep.subr.bf16.mxu0 (!%p138_p2), %v1767_v2  ;;  %1444 = vmatprep.subr.bf16.mxu1 (!%p138_p2), %v1767_v2  ;;  %v1805_v7 = vld [vmem:[%s2049_s1 + $0x18] sm:$0xff] (!%p138_p2)   ;;  %v1824_v9 = vld [vmem:[%s2049_s1 + $0x20] sm:$0xff] (!%p138_p2)   ;;  %v1840_v13 = vld [vmem:[%s2049_s1 + $0x28] sm:$0xff] (!%p138_p2)  }
   0x9   : > { %v1847_v14 = vld [vmem:[%s2049_s1 + $0x70] sm:$0xff] (!%p138_p2)   ;;  %v1861_v16 = vld [vmem:[%s2049_s1 + $0x78] sm:$0xff] (!%p138_p2)   ;;  %v1875_v18 = vld [vmem:[%s2049_s1 + $0x80] sm:$0xff] (!%p138_p2)  }
   0xa   : > { %v1854_v15 = vld [vmem:[%s2049_s1 + $0x30] sm:$0xff] (!%p138_p2)   ;;  %v1868_v17 = vld [vmem:[%s2049_s1 + $0x38] sm:$0xff] (!%p138_p2)   ;;  %v1888_v23 = vld [vmem:[%s2049_s1 + $0x88] sm:$0xff] (!%p138_p2)  }
   0xb   : > { %1399 = vmatpush3.bf16.msra.mxu0 (!%p138_p2), %v1774_v3  ;;  %1445 = vmatpush3.bf16.msra.mxu1 (!%p138_p2), %v1774_v3 }
   0xc   : > { %1400 = vmatprep.subr.bf16.mxu0 (!%p138_p2), %v1781_v4  ;;  %1446 = vmatprep.subr.bf16.mxu1 (!%p138_p2), %v1781_v4 }
   0xd   : > { %s2053_s13 = smov (!%p161_p3, %s1262_s13), 1 }
   0xe   : > { %s1628_s28 = smul.u32 336, %s2053_s13 }
   0xf   : > { %1401 = vmatpush3.bf16.msra.mxu0 %v1790_v5  ;;  %1447 = vmatpush3.bf16.msra.mxu1 %v1790_v5  ;;  %s1629_s29 = smul.u32 56, %s2053_s13 }
  0x10   : > { %1402 = vmatprep.subr.bf16.mxu0 %v1797_v6  ;;  %1448 = vmatprep.subr.bf16.mxu1 %v1797_v6  ;;  %s1817_s8 = scalar_lea.vmem %s2048_s0, %s1628_s28 }
  0x11   : > { %v1656_v11 = vld [vmem:[%s1817_s8 + $0x4] ss:$12 sps:$4 sm:$0xff]   ;;  %v1654_v19 = vld [vmem:[%s1817_s8] ss:$12 sps:$4 sm:$0xff]   ;;  %v1661_v21 = vld [vmem:[%s1817_s8 + $0x1c] ss:$12 sps:$4 sm:$0xff]   ;;  %s2030_s13 = scalar_lea.vmem %s2051_s3, %s1629_s29 }
  0x12   : > { %v1659_v12 = vld [vmem:[%s1817_s8 + $0x58] ss:$12 sps:$4 sm:$0xff]   ;;  %430 = vmatprep.mubr.bf16.mxu0 %v1656_v11  ;;  %v1657_v20 = vld [vmem:[%s1817_s8 + $0x54] ss:$12 sps:$4 sm:$0xff]   ;;  %v1663_v22 = vld [vmem:[%s1817_s8 + $0x70] ss:$12 sps:$4 sm:$0xff]  }
  0x13   : > { %1403 = vmatpush3.bf16.msra.mxu0 %v1805_v7  ;;  %1449 = vmatpush3.bf16.msra.mxu1 %v1805_v7  ;;  %v1665_v24 = vld [vmem:[%s1817_s8 + $0x18] ss:$12 sps:$4 sm:$0xff]   ;;  %v1667_v26 = vld [vmem:[%s1817_s8 + $0x34] ss:$12 sps:$4 sm:$0xff]   ;;  %v220_v28 = vld [vmem:[%s1817_s8 + $0x48] sm:$0x11] }
  0x14   : > { %1404 = vmatprep.subr.bf16.mxu0 %v1812_v8  ;;  %1450 = vmatprep.subr.bf16.mxu1 %v1812_v8  ;;  %v1666_v25 = vld [vmem:[%s1817_s8 + $0x6c] ss:$12 sps:$4 sm:$0xff]   ;;  %v1669_v27 = vld [vmem:[%s1817_s8 + $0x88] ss:$12 sps:$4 sm:$0xff]   ;;  %v1315_v29 = vld [vmem:[%s1817_s8 + $0x9c] sm:$0x11]  ;;  %v1279_v32 = vcombine.high %v220_v28, %v220_v28  ;;  %v1278_v34 = vcombine.low %v220_v28, %v220_v28 }
  0x15   : > { %640 = vmatprep.mubr.bf16.mxu1 %v1659_v12  ;;  %v1671_v30 = vld [vmem:[%s1817_s8 + $0x30] ss:$12 sps:$4 sm:$0xff]   ;;  %v1327_v33 = vcombine.high %v1315_v29, %v1315_v29  ;;  %v1326_v35 = vcombine.low %v1315_v29, %v1315_v29  ;;  %v1678_v36 = vld [vmem:[%s1817_s8 + $0x8] ss:$12 sps:$4 sm:$0xff]   ;;  %v1681_v37 = vld [vmem:[%s1817_s8 + $0xac] ss:$12 sps:$4 sm:$0xff]  }
  0x16   : > { %v1673_v31 = vld [vmem:[%s1817_s8 + $0x84] ss:$12 sps:$4 sm:$0xff]   ;;  %v1679_v38 = vld [vmem:[%s1817_s8 + $0xa8] ss:$12 sps:$4 sm:$0xff]   ;;  %v1682_v39 = vld [vmem:[%s1817_s8 + $0x20] ss:$12 sps:$4 sm:$0xff]  }
  0x17   : > { %1405 = vmatpush3.bf16.msra.mxu0 %v1824_v9  ;;  %1451 = vmatpush3.bf16.msra.mxu1 %v1824_v9  ;;  %v1683_v40 = vld [vmem:[%s1817_s8 + $0x38] ss:$12 sps:$4 sm:$0xff]   ;;  %v1686_v42 = vld [vmem:[%s1817_s8 + $0x50] ss:$0 sps:$4 sm:$0x11]  }
  0x18   : > { %1406 = vmatprep.subr.bf16.mxu0 %v1831_v10  ;;  %1452 = vmatprep.subr.bf16.mxu1 %v1831_v10  ;;  %v1684_v41 = vld [vmem:[%s1817_s8 + $0xc4] ss:$12 sps:$4 sm:$0xff]   ;;  %v1687_v43 = vld [vmem:[%s1817_s8 + $0xc0] ss:$12 sps:$4 sm:$0xff]   ;;  %v1688_v44 = vld [vmem:[%s1817_s8 + $0x5c] ss:$12 sps:$4 sm:$0xff]  }
  0x19   : > { %v1689_v45 = vld [vmem:[%s1817_s8 + $0xdc] ss:$12 sps:$4 sm:$0xff]   ;;  %v1691_v46 = vld [vmem:[%s1817_s8 + $0x74] ss:$12 sps:$4 sm:$0xff]   ;;  %v1692_v47 = vld [vmem:[%s1817_s8 + $0xd8] ss:$12 sps:$4 sm:$0xff]  }
  0x1a   : > { %v1345_v48 = vld [vmem:[%s1817_s8 + $0xf0] sm:$0x11]  ;;  %v1693_v49 = vld [vmem:[%s1817_s8 + $0x8c] ss:$12 sps:$4 sm:$0xff]   ;;  %v1698_v55 = vld [vmem:[%s1817_s8 + $0xfc] ss:$12 sps:$4 sm:$0xff]  }
  0x1b   : > { %1407 = vmatpush3.bf16.msra.mxu0 %v1840_v13  ;;  %1453 = vmatpush3.bf16.msra.mxu1 %v1840_v13  ;;  %v1357_v50 = vcombine.high %v1345_v48, %v1345_v48  ;;  %v1695_v51 = vld [vmem:[%s1817_s8 + $0xa4] ss:$0 sps:$4 sm:$0x11]   ;;  %v1356_v52 = vcombine.low %v1345_v48, %v1345_v48  ;;  %v1697_v53 = vld [vmem:[%s1817_s8 + $0xb0] ss:$12 sps:$4 sm:$0xff]  }
  0x1c   : > { %1408 = vmatprep.subr.bf16.mxu0 %v1847_v14  ;;  %1454 = vmatprep.subr.bf16.mxu1 %v1847_v14  ;;  %v1700_v54 = vld [vmem:[%s1817_s8 + $0x100] ss:$12 sps:$4 sm:$0xff]   ;;  %v1701_v56 = vld [vmem:[%s1817_s8 + $0xc8] ss:$12 sps:$4 sm:$0xff]   ;;  %v1703_v58 = vld [vmem:[%s1817_s8 + $0x118] ss:$12 sps:$4 sm:$0xff]  }
  0x1d   : > { %v1702_v57 = vld [vmem:[%s1817_s8 + $0xe0] ss:$12 sps:$4 sm:$0xff]   ;;  %v1705_v59 = vld [vmem:[%s1817_s8 + $0xf8] ss:$0 sps:$4 sm:$0x11]  }
  0x1e   : > { %v1706_v60 = vld [vmem:[%s1817_s8 + $0x114] ss:$12 sps:$4 sm:$0xff]   ;;  %v1707_v61 = vld [vmem:[%s1817_s8 + $0x130] ss:$12 sps:$4 sm:$0xff]   ;;  %v1375_v63 = vld [vmem:[%s1817_s8 + $0x144] sm:$0x11] }
  0x1f   : > { %1409 = vmatpush3.bf16.msra.mxu0 %v1854_v15  ;;  %1455 = vmatpush3.bf16.msra.mxu1 %v1854_v15  ;;  %v1709_v62 = vld [vmem:[%s1817_s8 + $0x104] ss:$12 sps:$4 sm:$0xff]  }
  0x20   : > { %1410 = vmatprep.subr.bf16.mxu0 %v1861_v16  ;;  %1456 = vmatprep.subr.bf16.mxu1 %v1861_v16 }
  0x23   : > { %1411 = vmatpush3.bf16.msra.mxu0 %v1868_v17  ;;  %1457 = vmatpush3.bf16.msra.mxu1 %v1868_v17 }
  0x24   : > { %1580 = vmatprep.subr.bf16.mxu0 %v1875_v18  ;;  %1488 = vmatprep.subr.bf16.mxu1 %v1755_v0 }
  0x26   : > { %431 = vmatmul.mubr.bf16.vlgmr.msra.gmra.mrb[0].mxu0 %v1654_v19  ;;  %641 = vmatmul.mubr.bf16.vlgmr.msra.gmra.mrb[0].mxu1 %v1657_v20 }
  0x27   : > { %1581 = vmatpush3.bf16.msra.mxu0 %v1875_v18  ;;  %1489 = vmatpush3.bf16.msra.mxu1 %v1760_v1 }
  0x28   : > { %1490 = vmatprep.subr.bf16.mxu1 %v1767_v2  ;;  %438 = vmatprep.mubr.bf16.mxu0 %v1661_v21 }
  0x29   : > { %648 = vmatprep.mubr.bf16.mxu1 %v1663_v22  ;;  %1582 = vmatprep.subr.bf16.mxu0 %v1888_v23 }
  0x2b   : > { %1491 = vmatpush3.bf16.msra.mxu1 %v1774_v3  ;;  %1583 = vmatpush3.bf16.msra.mxu0 %v1888_v23 }
  0x2c   : > { %1492 = vmatprep.subr.bf16.mxu1 %v1781_v4  ;;  %1592 = vmatprep.subr.bf16.mxu0 %v1875_v18 }
  0x2e   : > { %439 = vmatmul.mubr.bf16.gmra.mrb[4].mxu0 %v1665_v24  ;;  %649 = vmatmul.mubr.bf16.gmra.mrb[4].mxu1 %v1666_v25 }
  0x2f   : > { %1493 = vmatpush3.bf16.msra.mxu1 %v1790_v5  ;;  %446 = vmatprep.mubr.bf16.mxu0 %v1667_v26 }
  0x30   : > { %1494 = vmatprep.subr.bf16.mxu1 %v1797_v6  ;;  %656 = vmatprep.mubr.bf16.mxu1 %v1669_v27 }
  0x33   : > { %1495 = vmatpush3.bf16.msra.mxu1 %v1805_v7 }
  0x34   : > { %1496 = vmatprep.subr.bf16.mxu1 %v1812_v8 }
  0x36   : > { %447 = vmatmul.mubr.bf16.gmra.mrb[8].mxu0 %v1671_v30  ;;  %657 = vmatmul.mubr.bf16.gmra.mrb[8].mxu1 %v1673_v31 }
  0x37   : > { %1497 = vmatpush3.bf16.msra.mxu1 %v1824_v9  ;;  %454 = vmatprep.mubr.bf16.mxu0 %v1279_v32 }
  0x38   : > { %1498 = vmatprep.subr.bf16.mxu1 %v1831_v10  ;;  %664 = vmatprep.mubr.bf16.mxu1 %v1327_v33 }
  0x3b   : > { %1499 = vmatpush3.bf16.msra.mxu1 %v1840_v13 }
  0x3c   : > { %1500 = vmatprep.subr.bf16.mxu1 %v1847_v14 }
  0x3e   : > { %455 = vmatmul.mubr.bf16.gmra.mrb[12].mxu0 %v1278_v34  ;;  %665 = vmatmul.mubr.bf16.gmra.mrb[12].mxu1 %v1326_v35 }
  0x3f   : > { %1501 = vmatpush3.bf16.msra.mxu1 %v1854_v15  ;;  %1584 = vmatprep.mubr.msk.bf16.mxu0 %vm385_vm0, %v1678_v36 }
  0x40   : > { %1502 = vmatprep.subr.bf16.mxu1 %v1861_v16  ;;  %857 = vmatprep.mubr.bf16.mxu1 %v1681_v37 }
  0x43   : > { %1503 = vmatpush3.bf16.msra.mxu1 %v1868_v17 }
  0x44   : > { %1534 = vmatprep.subr.bf16.mxu1 %v1755_v0  ;;  %v1710_v0 = vld [vmem:[%s1817_s8 + $0x12c] ss:$12 sps:$4 sm:$0xff]  }
  0x46   : > { %1585 = vmatmul.mubr.msk.bf16.vlgmr.msra.gmra.mrb[16].mxu0 %vm385_vm0, %v1682_v39  ;;  %858 = vmatmul.mubr.bf16.vlgmr.msra.gmra.mrb[16].mxu1 %v1679_v38 }
  0x47   : > { %1593 = vmatpush3.bf16.msra.mxu0 %v1875_v18  ;;  %1535 = vmatpush3.bf16.msra.mxu1 %v1760_v1  ;;  %v1711_v1 = vld [vmem:[%s1817_s8 + $0x11c] ss:$12 sps:$4 sm:$0xff]  }
  0x48   : > { %1536 = vmatprep.subr.bf16.mxu1 %v1767_v2  ;;  %1588 = vmatprep.mubr.msk.bf16.mxu0 %vm385_vm0, %v1683_v40  ;;  %v1387_v2 = vcombine.high %v1375_v63, %v1375_v63 }
  0x49   : > { %865 = vmatprep.mubr.bf16.mxu1 %v1684_v41  ;;  %1594 = vmatprep.subr.bf16.mxu0 %v1888_v23 }
  0x4b   : > { %1537 = vmatpush3.bf16.msra.mxu1 %v1774_v3  ;;  %1595 = vmatpush3.bf16.msra.mxu0 %v1888_v23  ;;  %v1713_v3 = vld [vmem:[%s1817_s8 + $0x134] ss:$12 sps:$4 sm:$0xff]  }
  0x4c   : > { %1538 = vmatprep.subr.bf16.mxu1 %v1781_v4  ;;  %1604 = vmatprep.subr.bf16.mxu0 %v1875_v18  ;;  %v1386_v4 = vcombine.low %v1375_v63, %v1375_v63 }
  0x4e   : > { %1589 = vmatmul.mubr.msk.bf16.gmra.mrb[20].mxu0 %vm385_vm0, %v1686_v42  ;;  %866 = vmatmul.mubr.bf16.gmra.mrb[20].mxu1 %v1687_v43 }
  0x4f   : > { %1539 = vmatpush3.bf16.msra.mxu1 %v1790_v5  ;;  %1596 = vmatprep.mubr.msk.bf16.mxu0 %vm385_vm0, %v1688_v44  ;;  %v1715_v5 = vld [vmem:[%s1817_s8 + $0x14c] ss:$0 sps:$4 sm:$0x11]  }
  0x50   : > { %1540 = vmatprep.subr.bf16.mxu1 %v1797_v6  ;;  %873 = vmatprep.mubr.bf16.mxu1 %v1689_v45 }
  0x53   : > { %1541 = vmatpush3.bf16.msra.mxu1 %v1805_v7 }
  0x54   : > { %1542 = vmatprep.subr.bf16.mxu1 %v1812_v8 }
  0x56   : > { %1597 = vmatmul.mubr.msk.bf16.vlgmr.msra.gmra.mrb[24].mxu0 %vm385_vm0, %v1691_v46  ;;  %874 = vmatmul.mubr.bf16.gmra.mrb[24].mxu1 %v1692_v47 }
  0x57   : > { %1605 = vmatpush3.bf16.msra.mxu0 %v1875_v18  ;;  %1543 = vmatpush3.bf16.msra.mxu1 %v1824_v9 }
  0x58   : > { %1544 = vmatprep.subr.bf16.mxu1 %v1831_v10  ;;  %1600 = vmatprep.mubr.msk.bf16.mxu0 %vm385_vm0, %v1693_v49 }
  0x59   : > { %881 = vmatprep.mubr.bf16.mxu1 %v1357_v50  ;;  %1606 = vmatprep.subr.bf16.mxu0 %v1888_v23 }
  0x5b   : > { %1545 = vmatpush3.bf16.msra.mxu1 %v1840_v13  ;;  %1607 = vmatpush3.bf16.msra.mxu0 %v1888_v23 }
  0x5c   : > { %1546 = vmatprep.subr.bf16.mxu1 %v1847_v14  ;;  %1616 = vmatprep.subr.bf16.mxu0 %v1875_v18 }
  0x5e   : > { %1601 = vmatmul.mubr.msk.bf16.gmra.mrb[28].mxu0 %vm385_vm0, %v1695_v51  ;;  %882 = vmatmul.mubr.bf16.gmra.mrb[28].mxu1 %v1356_v52 }
  0x5f   : > { %1547 = vmatpush3.bf16.msra.mxu1 %v1854_v15  ;;  %1608 = vmatprep.mubr.msk.bf16.mxu0 %vm385_vm0, %v1697_v53 }
  0x60   : > { %1548 = vmatprep.subr.bf16.mxu1 %v1861_v16  ;;  %1074 = vmatprep.mubr.bf16.mxu1 %v1700_v54 }
  0x63   : > { %1549 = vmatpush3.bf16.msra.mxu1 %v1868_v17 }
  0x66   : > { %1609 = vmatmul.mubr.msk.bf16.vlgmr.msra.gmra.mrb[32].mxu0 %vm385_vm0, %v1701_v56  ;;  %1075 = vmatmul.mubr.bf16.vlgmr.msra.gmra.mrb[32].mxu1 %v1698_v55 }
  0x67   : > { %1617 = vmatpush3.bf16.msra.mxu0 %v1875_v18  ;;  %1612 = vmatprep.mubr.msk.bf16.mxu0 %vm385_vm0, %v1702_v57 }
  0x68   : > { %1082 = vmatprep.mubr.bf16.mxu1 %v1703_v58  ;;  %1618 = vmatprep.subr.bf16.mxu0 %v1888_v23 }
  0x6b   : > { %1619 = vmatpush3.bf16.msra.mxu0 %v1888_v23 }
  0x6e   : > { %1613 = vmatmul.mubr.msk.bf16.gmra.mrb[36].mxu0 %vm385_vm0, %v1705_v59  ;;  %1083 = vmatmul.mubr.bf16.gmra.mrb[36].mxu1 %v1706_v60 }
  0x6f   : > { %1090 = vmatprep.mubr.bf16.mxu1 %v1707_v61  ;;  %1620 = vmatprep.mubr.msk.bf16.mxu0 %vm385_vm0, %v1709_v62 }
  0x76   : > { %1091 = vmatmul.mubr.bf16.gmra.mrb[40].mxu1 %v1710_v0  ;;  %1621 = vmatmul.mubr.msk.bf16.vlgmr.msra.gmra.mrb[40].mxu0 %vm385_vm0, %v1711_v1 }
  0x77   : > { %1098 = vmatprep.mubr.bf16.mxu1 %v1387_v2  ;;  %1624 = vmatprep.mubr.msk.bf16.mxu0 %vm385_vm0, %v1713_v3 }
  0x7e   : > { %1099 = vmatmul.mubr.bf16.gmra.mrb[44].mxu1 %v1386_v4  ;;  %1625 = vmatmul.mubr.msk.bf16.gmra.mrb[44].mxu0 %vm385_vm0, %v1715_v5 }
  0xf9   : > { %v1412_v6 = vpop.f32.mrb[0].mxu0  ;;  %v1458_v7 = vpop.f32.mrb[0].mxu1 }
  0xfa   : > { %v1413_v8 = vpop.f32.mrb[1].mxu0  ;;  %v1459_v9 = vpop.f32.mrb[1].mxu1 }
  0xfb   : > { %v1414_v10 = vadd.f32 %v1413_v8, %v1412_v6  ;;  %v1990_v11 = vadd.f32 %v1459_v9, %v1458_v7  ;;  %v1415_v12 = vpop.f32.mrb[2].mxu0  ;;  %v1461_v13 = vpop.f32.mrb[2].mxu1 }
  0xfc   : > { %v1416_v14 = vpop.f32.mrb[3].mxu0  ;;  %v1462_v15 = vpop.f32.mrb[3].mxu1 }
  0xfd   : > { %v1417_v16 = vadd.f32 %v1416_v14, %v1415_v12  ;;  %v1992_v17 = vadd.f32 %v1462_v15, %v1461_v13 }
 0x101   : > { %v1418_v18 = vpop.f32.mrb[4].mxu0  ;;  %v1464_v19 = vpop.f32.mrb[4].mxu1 }
 0x102   : > { %v1419_v20 = vpop.f32.mrb[5].mxu0  ;;  %v1465_v21 = vpop.f32.mrb[5].mxu1 }
 0x103   : > { %v1420_v22 = vadd.f32 %v1419_v20, %v1418_v18  ;;  %v1466_v23 = vadd.f32 %v1465_v21, %v1464_v19  ;;  %v1421_v24 = vpop.f32.mrb[6].mxu0  ;;  %v1467_v25 = vpop.f32.mrb[6].mxu1 }
 0x104   : > { %v1422_v26 = vpop.f32.mrb[7].mxu0  ;;  %v1468_v27 = vpop.f32.mrb[7].mxu1 }
 0x105   : > { %v1423_v28 = vadd.f32 %v1422_v26, %v1421_v24  ;;  %v1469_v29 = vadd.f32 %v1468_v27, %v1467_v25 }
 0x109   : > { %v1424_v30 = vpop.f32.mrb[8].mxu0  ;;  %v1470_v31 = vpop.f32.mrb[8].mxu1 }
 0x10a   : > { %v1425_v32 = vpop.f32.mrb[9].mxu0  ;;  %v1471_v33 = vpop.f32.mrb[9].mxu1 }
 0x10b   : > { %v1426_v34 = vadd.f32 %v1425_v32, %v1424_v30  ;;  %v1994_v35 = vadd.f32 %v1471_v33, %v1470_v31  ;;  %v1427_v36 = vpop.f32.mrb[10].mxu0  ;;  %v1473_v37 = vpop.f32.mrb[10].mxu1 }
 0x10c   : > { %v1428_v38 = vpop.f32.mrb[11].mxu0  ;;  %v1474_v39 = vpop.f32.mrb[11].mxu1 }
 0x10d   : > { %v1429_v40 = vadd.f32 %v1428_v38, %v1427_v36  ;;  %v1996_v41 = vadd.f32 %v1474_v39, %v1473_v37 }
 0x111   : > { %v1430_v42 = vpop.f32.mrb[12].mxu0  ;;  %v1476_v43 = vpop.f32.mrb[12].mxu1 }
 0x112   : > { %v1431_v44 = vpop.f32.mrb[13].mxu0  ;;  %v1477_v45 = vpop.f32.mrb[13].mxu1 }
 0x113   : > { %v1432_v46 = vadd.f32 %v1431_v44, %v1430_v42  ;;  %v1478_v47 = vadd.f32 %v1477_v45, %v1476_v43  ;;  %v1433_v48 = vpop.f32.mrb[14].mxu0  ;;  %v1479_v49 = vpop.f32.mrb[14].mxu1 }
 0x114   : > { %v1434_v50 = vpop.f32.mrb[15].mxu0  ;;  %v1480_v51 = vpop.f32.mrb[15].mxu1 }
 0x119   : > { %v1586_v52 = vpop.f32.mrb[16].mxu0  ;;  %v1504_v53 = vpop.f32.mrb[16].mxu1 }
 0x11a   : > { %v1998_v54 = vadd.f32 %v1586_v52, %v1420_v22  ;;  %v496_v55 = vpop.f32.mrb[17].mxu0  ;;  %v1505_v56 = vpop.f32.mrb[17].mxu1 }
 0x11b   : > { %v2000_v57 = vadd.f32 %v1414_v10, %v496_v55  ;;  %v1506_v58 = vadd.f32 %v1505_v56, %v1504_v53  ;;  %v1587_v59 = vpop.f32.mrb[18].mxu0  ;;  %v1507_v60 = vpop.f32.mrb[18].mxu1 }
 0x11c   : > { %v2002_v61 = vadd.f32 %v1587_v59, %v1423_v28  ;;  %v499_v62 = vpop.f32.mrb[19].mxu0  ;;  %v1508_v63 = vpop.f32.mrb[19].mxu1 }
 0x11d   : > { %v2004_v0 = vadd.f32 %v1417_v16, %v499_v62  ;;  %v1509_v1 = vadd.f32 %v1508_v63, %v1507_v60 }
 0x121   : > { %v1590_v2 = vpop.f32.mrb[20].mxu0  ;;  %v1510_v3 = vpop.f32.mrb[20].mxu1 }
 0x122   : > { %v2006_v4 = vadd.f32 %v1590_v2, %v1432_v46  ;;  %v512_v5 = vpop.f32.mrb[21].mxu0  ;;  %v1511_v6 = vpop.f32.mrb[21].mxu1 }
 0x123   : > { %v2008_v7 = vadd.f32 %v1426_v34, %v512_v5  ;;  %v1512_v8 = vadd.f32 %v1511_v6, %v1510_v3  ;;  %v1591_v9 = vpop.f32.mrb[22].mxu0  ;;  %v1513_v10 = vpop.f32.mrb[22].mxu1 }
 0x124   : > { %v515_v12 = vpop.f32.mrb[23].mxu0  ;;  %v1514_v13 = vpop.f32.mrb[23].mxu1 }
 0x125   : > { %v2010_v14 = vadd.f32 %v1429_v40, %v515_v12  ;;  %v1515_v15 = vadd.f32 %v1514_v13, %v1513_v10 }
 0x129   : > { %v1598_v18 = vpop.f32.mrb[24].mxu0  ;;  %v1516_v16 = vpop.f32.mrb[24].mxu1 }
 0x12a   : > { %v715_v19 = vadd.f32 %v1598_v18, %v1466_v23  ;;  %v706_v20 = vpop.f32.mrb[25].mxu0  ;;  %v1517_v21 = vpop.f32.mrb[25].mxu1 }
 0x12b   : > { %v707_v22 = vadd.f32 %v1990_v11, %v706_v20  ;;  %v1518_v24 = vadd.f32 %v1517_v21, %v1516_v16  ;;  %v1599_v25 = vpop.f32.mrb[26].mxu0  ;;  %v1519_v26 = vpop.f32.mrb[26].mxu1 }
 0x12c   : > { %v738_v27 = vmax.f32 %v1998_v54, %v715_v19  ;;  %v718_v28 = vadd.f32 %v1599_v25, %v1469_v29  ;;  %v709_v30 = vpop.f32.mrb[27].mxu0  ;;  %v1520_v31 = vpop.f32.mrb[27].mxu1 }
 0x12d   : > { %v736_v32 = vmax.f32 %v2000_v57, %v707_v22  ;;  %v710_v33 = vadd.f32 %v1992_v17, %v709_v30  ;;  %v1521_v34 = vadd.f32 %v1520_v31, %v1519_v26 }
 0x12e   : > { %v739_v36 = vmax.f32 %v2002_v61, %v718_v28 }
 0x12f   : > { %v737_v23 = vmax.f32 %v2004_v0, %v710_v33 }
 0x131   : > { %v1602_v37 = vpop.f32.mrb[28].mxu0  ;;  %v1522_v38 = vpop.f32.mrb[28].mxu1 }
 0x132   : > { %v731_v11 = vadd.f32 %v1602_v37, %v1478_v47  ;;  %v722_v39 = vpop.f32.mrb[29].mxu0  ;;  %v1523_v40 = vpop.f32.mrb[29].mxu1 }
 0x133   : > { %v723_v42 = vadd.f32 %v1994_v35, %v722_v39  ;;  %v1524_v43 = vadd.f32 %v1523_v40, %v1522_v38  ;;  %v1603_v29 = vpop.f32.mrb[30].mxu0  ;;  %v1525_v44 = vpop.f32.mrb[30].mxu1 }
 0x134   : > { %v742_v45 = vmax.f32 %v2006_v4, %v731_v11  ;;  %v725_v46 = vpop.f32.mrb[31].mxu0  ;;  %v1526_v48 = vpop.f32.mrb[31].mxu1 }
 0x135   : > { %v740_v17 = vmax.f32 %v2008_v7, %v723_v42  ;;  %v726_v49 = vadd.f32 %v1996_v41, %v725_v46 }
 0x137   : > { %v741_v50 = vmax.f32 %v2010_v14, %v726_v49 }
 0x139   : > { %v1610_v51 = vpop.f32.mrb[32].mxu0  ;;  %v1550_v52 = vpop.f32.mrb[32].mxu1 }
 0x13a   : > { %v932_v47 = vadd.f32 %v1610_v51, %v1512_v8  ;;  %v923_v53 = vpop.f32.mrb[33].mxu0  ;;  %v1551_v54 = vpop.f32.mrb[33].mxu1 }
 0x13b   : > { %v924_v55 = vadd.f32 %v1506_v58, %v923_v53  ;;  %v1552_v35 = vadd.f32 %v1551_v54, %v1550_v52  ;;  %v1611_v56 = vpop.f32.mrb[34].mxu0  ;;  %v1553_v57 = vpop.f32.mrb[34].mxu1 }
 0x13c   : > { %v955_v59 = vmax.f32 %v738_v27, %v932_v47  ;;  %v935_v60 = vadd.f32 %v1611_v56, %v1515_v15  ;;  %v926_v61 = vpop.f32.mrb[35].mxu0  ;;  %v1554_v62 = vpop.f32.mrb[35].mxu1 }
 0x13d   : > { %v953_v63 = vmax.f32 %v736_v32, %v924_v55  ;;  %v927_v0 = vadd.f32 %v1509_v1, %v926_v61  ;;  %v1555_v2 = vadd.f32 %v1554_v62, %v1553_v57 }
 0x13e   : > { %v956_v3 = vmax.f32 %v739_v36, %v935_v60 }
 0x13f   : > { %v954_v41 = vmax.f32 %v737_v23, %v927_v0 }
 0x141   : > { %v1614_v4 = vpop.f32.mrb[36].mxu0  ;;  %v1556_v5 = vpop.f32.mrb[36].mxu1 }
 0x142   : > { %v948_v6 = vadd.f32 %v1614_v4, %v1524_v43  ;;  %v939_v7 = vpop.f32.mrb[37].mxu0  ;;  %v1557_v8 = vpop.f32.mrb[37].mxu1 }
 0x143   : > { %v940_v9 = vadd.f32 %v1518_v24, %v939_v7  ;;  %v1558_v58 = vadd.f32 %v1557_v8, %v1556_v5  ;;  %v1615_v10 = vpop.f32.mrb[38].mxu0  ;;  %v1559_v12 = vpop.f32.mrb[38].mxu1  ;;  %v1393_v24 = vld [vmem:[%s2050_s2] ss:$0 sm:$0xff] }
 0x144   : > { %v959_v13 = vmax.f32 %v742_v45, %v948_v6  ;;  %v942_v14 = vpop.f32.mrb[39].mxu0  ;;  %v1560_v15 = vpop.f32.mrb[39].mxu1 }
 0x145   : > { %v957_v18 = vmax.f32 %v740_v17, %v940_v9  ;;  %v943_v16 = vadd.f32 %v1521_v34, %v942_v14  ;;  %v1561_v19 = vadd.f32 %v1560_v15, %v1559_v12 }
 0x147   : > { %v958_v1 = vmax.f32 %v741_v50, %v943_v16 }
 0x149   : > { %v1562_v20 = vpop.f32.mrb[40].mxu1  ;;  %v1622_v21 = vpop.f32.mrb[40].mxu0 }
 0x14a   : > { %v1149_v22 = vadd.f32 %v1622_v21, %v1558_v58  ;;  %v1563_v25 = vpop.f32.mrb[41].mxu1  ;;  %v1140_v26 = vpop.f32.mrb[41].mxu0 }
 0x14b   : > { %v1564_v27 = vadd.f32 %v1563_v25, %v1562_v20  ;;  %v1141_v28 = vadd.f32 %v1552_v35, %v1140_v26  ;;  %v1565_v30 = vpop.f32.mrb[42].mxu1  ;;  %v1623_v31 = vpop.f32.mrb[42].mxu0 }
 0x14c   : > { %v1172_v32 = vmax.f32 %v955_v59, %v1149_v22  ;;  %v1152_v33 = vadd.f32 %v1623_v31, %v1561_v19  ;;  %v1566_v36 = vpop.f32.mrb[43].mxu1  ;;  %v1143_v34 = vpop.f32.mrb[43].mxu0 }
 0x14d   : > { %v1170_v23 = vmax.f32 %v953_v63, %v1141_v28  ;;  %v1567_v37 = vadd.f32 %v1566_v36, %v1565_v30  ;;  %v1144_v38 = vadd.f32 %v1555_v2, %v1143_v34 }
 0x14e   : > { %v1186_v11 = vadd.f32 %v1393_v24, %v1172_v32  ;;  %v1173_v39 = vmax.f32 %v956_v3, %v1152_v33 }
 0x14f   : > { %v1184_v40 = vadd.f32 %v1393_v24, %v1170_v23  ;;  %v1171_v42 = vmax.f32 %v954_v41, %v1144_v38 }
 0x150   : > { %v1193_v43 = vmax.f32 %v1186_v11, 0.0  ;;  %v1187_v29 = vadd.f32 %v1393_v24, %v1173_v39 }
 0x151   : > { %v1191_v44 = vmax.f32 %v1184_v40, 0.0  ;;  %v1185_v45 = vadd.f32 %v1393_v24, %v1171_v42  ;;  %v1568_v46 = vpop.f32.mrb[44].mxu1  ;;  %v1626_v48 = vpop.f32.mrb[44].mxu0 }
 0x152   : > { %1201 = vst.msk [vmem:[%s2030_s13 + $0x10] sm:$0xff] %vm1198_vm1, %v1193_v43  ;;  %v1194_v17 = vmax.f32 %v1187_v29, 0.0  ;;  %v1569_v49 = vpop.f32.mrb[45].mxu1  ;;  %v1156_v50 = vpop.f32.mrb[45].mxu0 }
 0x153   : > { %1199 = vst.msk [vmem:[%s2030_s13] sm:$0xff] %vm1198_vm1, %v1191_v44  ;;  %v1192_v51 = vmax.f32 %v1185_v45, 0.0  ;;  %v1570_v52 = vadd.f32 %v1569_v49, %v1568_v46  ;;  %v1157_v47 = vadd.f32 %v1564_v27, %v1156_v50  ;;  %v1571_v53 = vpop.f32.mrb[46].mxu1  ;;  %v1627_v54 = vpop.f32.mrb[46].mxu0 }
 0x154   : > { %1202 = vst.msk [vmem:[%s2030_s13 + $0x18] sm:$0xff] %vm1198_vm1, %v1194_v17  ;;  %v1572_v55 = vpop.f32.mrb[47].mxu1  ;;  %v1159_v35 = vpop.f32.mrb[47].mxu0 }
 0x155   : > { %1200 = vst.msk [vmem:[%s2030_s13 + $0x8] sm:$0xff] %vm1198_vm1, %v1192_v51  ;;  %v1165_v56 = vadd.f32 %v1626_v48, %v1570_v52  ;;  %v1174_v57 = vmax.f32 %v957_v18, %v1157_v47  ;;  %v1160_v59 = vadd.f32 %v1567_v37, %v1159_v35 }
 0x157   : > { %v1176_v60 = vmax.f32 %v959_v13, %v1165_v56  ;;  %v1188_v61 = vadd.f32 %v1393_v24, %v1174_v57  ;;  %v1175_v62 = vmax.f32 %v958_v1, %v1160_v59 }
 0x159   : > { %v1190_v63 = vadd.f32 %v1393_v24, %v1176_v60  ;;  %v1195_v0 = vmax.f32 %v1188_v61, 0.0  ;;  %v1189_v2 = vadd.f32 %v1393_v24, %v1175_v62 }
 0x15b   : > { %v1197_v3 = vmax.f32 %v1190_v63, 0.0  ;;  %1203 = vst.msk [vmem:[%s2030_s13 + $0x20] sm:$0xff] %vm1198_vm1, %v1195_v0  ;;  %v1196_v41 = vmax.f32 %v1189_v2, 0.0 }
 0x15d   : > { %1206 = vst.msk [vmem:[%s2030_s13 + $0x30] sm:$0x1] %vm1205_vm2, %v1197_v3 }
 0x15e   : > { %1204 = vst.msk [vmem:[%s2030_s13 + $0x28] sm:$0xff] %vm1198_vm1, %v1196_v41 }
 0x15f PF: > { %s13_s12 = sadd.s32 1, %s1722_s12  }
 0x160   : > { %p10_p4 = scmp.ge.s32.totalorder %s13_s12, 4  }
 0x162   :  { %12 = sbr.rel (!%p10_p4) target bundleno = 1 (0x1), region = 65 }

// kernel: cnn_forward.5
= control target key start
LH: loop header
LB: loop body
LE: loop exit
PB: predicated region body
PF: predicated region fallthrough
CT: control target
= control target key end

     0   :  { %v427_v27 = vlaneseq  ;;  %v3031_v35 = vmov 1966171168   ;;  %s3706_s0 = inlined_call_operand.vmem [shape: bf16[2,3136], index: 0, kind: input, shape index: {}]   ;;  %s3707_s1 = inlined_call_operand.vmem [shape: bf16[3136,9], index: 1, kind: input, shape index: {}]   ;;  %s3708_s2 = inlined_call_operand.vmem [shape: f32[1,9], index: 2, kind: input, shape index: {}]   ;;  %s3709_s3 = inlined_call_operand.hbm [shape: f32[2,9], index: 3, kind: output, shape index: {}]  }
   0x1   :  { %v2808_v0 = vld [vmem:[%s3707_s1 + $0x40] sm:$0xff]   ;;  %v2812_v4 = vld [vmem:[%s3707_s1 + $0x48] sm:$0xff]   ;;  %v2816_v8 = vld [vmem:[%s3707_s1 + $0x50] sm:$0xff]   ;;  %v425_v36 = vunpack.c.l.s4 %v3031_v35 }
   0x2   :  { %v2809_v1 = vld [vmem:[%s3707_s1] sm:$0xff]   ;;  %2523 = vmatprep.subr.bf16.mxu0 %v2808_v0  ;;  %v2813_v5 = vld [vmem:[%s3707_s1 + $0x8] sm:$0xff]   ;;  %v2817_v9 = vld [vmem:[%s3707_s1 + $0x10] sm:$0xff]   ;;  %v428_v32 = vshrl.u32 %v427_v27, 7 }
   0x3   :  { %v2810_v2 = vld [vmem:[%s3707_s1 + $0xc0] sm:$0xff]   ;;  %2524 = vmatpush3.bf16.msra.mxu0 %v2809_v1  ;;  %v2814_v6 = vld [vmem:[%s3707_s1 + $0xc8] sm:$0xff]   ;;  %v2818_v10 = vld [vmem:[%s3707_s1 + $0xd0] sm:$0xff]   ;;  %v426_v39 = vunpack.c.0.s8 %v425_v36 }
   0x4   :  { %v2811_v3 = vld [vmem:[%s3707_s1 + $0x80] sm:$0xff]   ;;  %2545 = vmatprep.subr.bf16.mxu1 %v2810_v2  ;;  %2525 = vmatprep.subr.bf16.mxu0 %v2812_v4  ;;  %v2815_v7 = vld [vmem:[%s3707_s1 + $0x88] sm:$0xff]   ;;  %v2819_v11 = vld [vmem:[%s3707_s1 + $0x90] sm:$0xff]  }
   0x5   :  { %2546 = vmatpush3.bf16.msra.mxu1 %v2811_v3  ;;  %v2820_v12 = vld [vmem:[%s3707_s1 + $0x58] sm:$0xff]   ;;  %v2824_v16 = vld [vmem:[%s3707_s1 + $0x60] sm:$0xff]   ;;  %v2828_v20 = vld [vmem:[%s3707_s1 + $0x68] sm:$0xff]   ;;  %v3160_v41 = vsub.s32 %v426_v39, %v428_v32 }
   0x6   :  { %2547 = vmatprep.subr.bf16.mxu1 %v2814_v6  ;;  %v2821_v13 = vld [vmem:[%s3707_s1 + $0x18] sm:$0xff]   ;;  %v2825_v17 = vld [vmem:[%s3707_s1 + $0x20] sm:$0xff]   ;;  %v2829_v21 = vld [vmem:[%s3707_s1 + $0x28] sm:$0xff]  }
   0x7   :  { %2526 = vmatpush3.bf16.msra.mxu0 %v2813_v5  ;;  %v2822_v14 = vld [vmem:[%s3707_s1 + $0xd8] sm:$0xff]   ;;  %v2826_v18 = vld [vmem:[%s3707_s1 + $0xe0] sm:$0xff]   ;;  %v2830_v22 = vld [vmem:[%s3707_s1 + $0xe8] sm:$0xff]  }
   0x8   :  { %2527 = vmatprep.subr.bf16.mxu0 %v2816_v8  ;;  %v2823_v15 = vld [vmem:[%s3707_s1 + $0x98] sm:$0xff]   ;;  %v2827_v19 = vld [vmem:[%s3707_s1 + $0xa0] sm:$0xff]   ;;  %v2831_v23 = vld [vmem:[%s3707_s1 + $0xa8] sm:$0xff]  }
   0x9   :  { %2548 = vmatpush3.bf16.msra.mxu1 %v2815_v7  ;;  %v2832_v24 = vld [vmem:[%s3707_s1 + $0x70] sm:$0xff]   ;;  %v2836_v29 = vld [vmem:[%s3707_s1 + $0x78] sm:$0xff]   ;;  %v16_v33 = vld [vmem:[%s3706_s0] sm:$0xff] }
   0xa   :  { %2549 = vmatprep.subr.bf16.mxu1 %v2818_v10  ;;  %v2833_v25 = vld [vmem:[%s3707_s1 + $0x30] sm:$0xff]   ;;  %v2837_v30 = vld [vmem:[%s3707_s1 + $0x38] sm:$0xff]   ;;  %v2841_v37 = vld [vmem:[%s3707_s1 + $0x140] sm:$0xff]   ;;  %v423_v38 = vcombine.high %v16_v33, %v16_v33  ;;  %v430_v42 = vrot.slane %v16_v33, %v3160_v41 }
   0xb   :  { %2528 = vmatpush3.bf16.msra.mxu0 %v2817_v9  ;;  %v2834_v26 = vld [vmem:[%s3707_s1 + $0xf0] sm:$0xff]   ;;  %v2838_v31 = vld [vmem:[%s3707_s1 + $0xf8] sm:$0xff]   ;;  %v2843_v40 = vld [vmem:[%s3707_s1 + $0x1c0] sm:$0xff]  }
   0xc   :  { %2529 = vmatprep.subr.bf16.mxu0 %v2820_v12  ;;  %v2835_v28 = vld [vmem:[%s3707_s1 + $0xb0] sm:$0xff]   ;;  %v2840_v34 = vld [vmem:[%s3707_s1 + $0xb8] sm:$0xff]   ;;  %v3164_v43 = vrot.slane %v423_v38, %v3160_v41  ;;  %v438_v44 = vcombine.high %v430_v42, %v430_v42  ;;  %v446_v45 = vrot.slane %v430_v42, %v3160_v41  ;;  %v2842_v48 = vld [vmem:[%s3707_s1 + $0x100] sm:$0xff]  }
   0xd   :  { %2550 = vmatpush3.bf16.msra.mxu1 %v2819_v11  ;;  %v2845_v51 = vld [vmem:[%s3707_s1 + $0x148] sm:$0xff]   ;;  %v2844_v53 = vld [vmem:[%s3707_s1 + $0x180] sm:$0xff]   ;;  %v2849_v57 = vld [vmem:[%s3707_s1 + $0x150] sm:$0xff]  }
   0xe   :  { %2551 = vmatprep.subr.bf16.mxu1 %v2822_v14  ;;  %v439_v46 = vcombine.high %v3164_v43, %v3164_v43  ;;  %v460_v47 = vrot.slane %v438_v44, %v3160_v41  ;;  %v468_v50 = vcombine.high %v446_v45, %v446_v45  ;;  %v2847_v54 = vld [vmem:[%s3707_s1 + $0x1c8] sm:$0xff]   ;;  %v2851_v59 = vld [vmem:[%s3707_s1 + $0x1d0] sm:$0xff]   ;;  %v2853_v61 = vld [vmem:[%s3707_s1 + $0x158] sm:$0xff]  }
   0xf   :  { %2530 = vmatpush3.bf16.msra.mxu0 %v2821_v13  ;;  %v2846_v56 = vld [vmem:[%s3707_s1 + $0x108] sm:$0xff]   ;;  %v2850_v60 = vld [vmem:[%s3707_s1 + $0x110] sm:$0xff]   ;;  %v2855_v63 = vld [vmem:[%s3707_s1 + $0x1d8] sm:$0xff]  }
  0x10   :  { %2531 = vmatprep.subr.bf16.mxu0 %v2824_v16  ;;  %v467_v49 = vrot.slane %v439_v46, %v3160_v41  ;;  %1820 = vmatprep.mubr.bf16.mxu0 %v460_v47  ;;  %v470_v52 = vcombine.high %v460_v47, %v460_v47  ;;  %v2848_v58 = vld [vmem:[%s3707_s1 + $0x188] sm:$0xff]   ;;  %v2852_v62 = vld [vmem:[%s3707_s1 + $0x190] sm:$0xff]   ;;  %v2854_v0 = vld [vmem:[%s3707_s1 + $0x118] sm:$0xff]  }
  0x11   :  { %2552 = vmatpush3.bf16.msra.mxu1 %v2823_v15  ;;  %v2857_v1 = vld [vmem:[%s3707_s1 + $0x160] sm:$0xff]   ;;  %v2856_v2 = vld [vmem:[%s3707_s1 + $0x198] sm:$0xff]   ;;  %v2861_v5 = vld [vmem:[%s3707_s1 + $0x168] sm:$0xff]  }
  0x12   :  { %2553 = vmatprep.subr.bf16.mxu1 %v2826_v18  ;;  %v471_v55 = vcombine.high %v467_v49, %v467_v49  ;;  %1860 = vmatprep.mubr.bf16.mxu1 %v470_v52  ;;  %v2859_v3 = vld [vmem:[%s3707_s1 + $0x1e0] sm:$0xff]   ;;  %v2863_v7 = vld [vmem:[%s3707_s1 + $0x1e8] sm:$0xff]   ;;  %v2865_v9 = vld [vmem:[%s3707_s1 + $0x170] sm:$0xff]  }
  0x13   :  { %2532 = vmatpush3.bf16.msra.mxu0 %v2825_v17  ;;  %v2858_v4 = vld [vmem:[%s3707_s1 + $0x120] sm:$0xff]   ;;  %v2862_v8 = vld [vmem:[%s3707_s1 + $0x128] sm:$0xff]   ;;  %v2867_v11 = vld [vmem:[%s3707_s1 + $0x1f0] sm:$0xff]   ;;  %v453_v17 = vrot.slane %v3164_v43, %v3160_v41 }
  0x14   :  { %2533 = vmatprep.subr.bf16.mxu0 %v2828_v20  ;;  %v2860_v6 = vld [vmem:[%s3707_s1 + $0x1a0] sm:$0xff]   ;;  %v2864_v10 = vld [vmem:[%s3707_s1 + $0x1a8] sm:$0xff]   ;;  %v2866_v12 = vld [vmem:[%s3707_s1 + $0x130] sm:$0xff]  }
  0x15   :  { %2554 = vmatpush3.bf16.msra.mxu1 %v2827_v19  ;;  %v2869_v13 = vld [vmem:[%s3707_s1 + $0x178] sm:$0xff]   ;;  %v2868_v14 = vld [vmem:[%s3707_s1 + $0x1b0] sm:$0xff]   ;;  %v2873_v18 = vld [vmem:[%s3707_s1 + $0x240] sm:$0xff]  }
  0x16   :  { %2555 = vmatprep.subr.bf16.mxu1 %v2830_v22  ;;  %v2871_v15 = vld [vmem:[%s3707_s1 + $0x1f8] sm:$0xff]   ;;  %v2875_v20 = vld [vmem:[%s3707_s1 + $0x2c0] sm:$0xff]   ;;  %v469_v22 = vcombine.high %v453_v17, %v453_v17  ;;  %v2881_v27 = vld [vmem:[%s3707_s1 + $0x250] sm:$0xff]  }
  0x17   :  { %2534 = vmatpush3.bf16.msra.mxu0 %v2829_v21  ;;  %v2870_v16 = vld [vmem:[%s3707_s1 + $0x138] sm:$0xff]   ;;  %v2874_v21 = vld [vmem:[%s3707_s1 + $0x200] sm:$0xff]   ;;  %v2884_v32 = vld [vmem:[%s3707_s1 + $0x290] sm:$0xff]  }
  0x18   :  { %2535 = vmatprep.subr.bf16.mxu0 %v2832_v24  ;;  %v2872_v19 = vld [vmem:[%s3707_s1 + $0x1b8] sm:$0xff]   ;;  %v2876_v24 = vld [vmem:[%s3707_s1 + $0x280] sm:$0xff]   ;;  %v2893_v39 = vld [vmem:[%s3707_s1 + $0x268] sm:$0xff]  }
  0x19   :  { %2556 = vmatpush3.bf16.msra.mxu1 %v2831_v23  ;;  %v2877_v23 = vld [vmem:[%s3707_s1 + $0x248] sm:$0xff]   ;;  %v2887_v33 = vld [vmem:[%s3707_s1 + $0x2d8] sm:$0xff]   ;;  %v2889_v35 = vld [vmem:[%s3707_s1 + $0x260] sm:$0xff]  }
  0x1a   :  { %2557 = vmatprep.subr.bf16.mxu1 %v2834_v26  ;;  %v2878_v26 = vld [vmem:[%s3707_s1 + $0x208] sm:$0xff]   ;;  %v2888_v36 = vld [vmem:[%s3707_s1 + $0x298] sm:$0xff]   ;;  %v2890_v38 = vld [vmem:[%s3707_s1 + $0x220] sm:$0xff]  }
  0x1b   :  { %2536 = vmatpush3.bf16.msra.mxu0 %v2833_v25  ;;  %v2879_v25 = vld [vmem:[%s3707_s1 + $0x2c8] sm:$0xff]   ;;  %v2897_v44 = vld [vmem:[%s3707_s1 + $0x270] sm:$0xff]  }
  0x1c   :  { %2537 = vmatprep.subr.bf16.mxu0 %v2836_v29  ;;  %v2883_v29 = vld [vmem:[%s3707_s1 + $0x2d0] sm:$0xff]   ;;  %v2895_v42 = vld [vmem:[%s3707_s1 + $0x2e8] sm:$0xff]  }
  0x1d   :  { %2558 = vmatpush3.bf16.msra.mxu1 %v2835_v28  ;;  %v2880_v28 = vld [vmem:[%s3707_s1 + $0x288] sm:$0xff]  }
  0x1e   :  { %2559 = vmatprep.subr.bf16.mxu1 %v2838_v31  ;;  %v2885_v31 = vld [vmem:[%s3707_s1 + $0x258] sm:$0xff]   ;;  %v2894_v43 = vld [vmem:[%s3707_s1 + $0x228] sm:$0xff]  }
  0x1f   :  { %2538 = vmatpush3.bf16.msra.mxu0 %v2837_v30  ;;  %v2882_v30 = vld [vmem:[%s3707_s1 + $0x210] sm:$0xff]   ;;  %v2896_v46 = vld [vmem:[%s3707_s1 + $0x2a8] sm:$0xff]  }
  0x20   :  { %2567 = vmatprep.subr.bf16.mxu0 %v2841_v37  ;;  %v2891_v37 = vld [vmem:[%s3707_s1 + $0x2e0] sm:$0xff]  }
  0x21   :  { %2560 = vmatpush3.bf16.msra.mxu1 %v2840_v34  ;;  %v2886_v34 = vld [vmem:[%s3707_s1 + $0x218] sm:$0xff]  }
  0x22   :  { %2589 = vmatprep.subr.bf16.mxu1 %v2843_v40  ;;  %1821 = vmatmul.mubr.bf16.vlgmr.msra.gmra.mrb[0].mxu0 %v446_v45  ;;  %v2892_v40 = vld [vmem:[%s3707_s1 + $0x2a0] sm:$0xff]   ;;  %v17_v45 = vld [vmem:[%s3706_s0 + $0x8] sm:$0xff] }
  0x23   :  { %2568 = vmatpush3.bf16.msra.mxu0 %v2842_v48  ;;  %1900 = vmatprep.mubr.bf16.mxu0 %v467_v49  ;;  %v479_v47 = vrot.slane %v17_v45, %v3160_v41  ;;  %v472_v48 = vcombine.high %v17_v45, %v17_v45  ;;  %v2899_v49 = vld [vmem:[%s3707_s1 + $0x2f0] sm:$0xff]  }
  0x24   :  { %1861 = vmatmul.mubr.bf16.vlgmr.msra.gmra.mrb[0].mxu1 %v468_v50  ;;  %2569 = vmatprep.subr.bf16.mxu0 %v2845_v51  ;;  %v2898_v50 = vld [vmem:[%s3707_s1 + $0x230] sm:$0xff]  }
  0x25   :  { %2590 = vmatpush3.bf16.msra.mxu1 %v2844_v53  ;;  %1940 = vmatprep.mubr.bf16.mxu1 %v471_v55  ;;  %v487_v51 = vcombine.high %v479_v47, %v479_v47  ;;  %v3349_v52 = vrot.slane %v472_v48, %v3160_v41  ;;  %v2901_v53 = vld [vmem:[%s3707_s1 + $0x278] sm:$0xff]   ;;  %v2948_v45 = vld [vmem:[%s3707_s1 + $0x4d0] sm:$0xff]  }
  0x26   :  { %2591 = vmatprep.subr.bf16.mxu1 %v2847_v54  ;;  %v2900_v54 = vld [vmem:[%s3707_s1 + $0x2b0] sm:$0xff]  }
  0x27   :  { %2570 = vmatpush3.bf16.msra.mxu0 %v2846_v56  ;;  %v509_v55 = vrot.slane %v487_v51, %v3160_v41  ;;  %v488_v56 = vcombine.high %v3349_v52, %v3349_v52  ;;  %v2949_v48 = vld [vmem:[%s3707_s1 + $0x490] sm:$0xff]   ;;  %v2954_v51 = vld [vmem:[%s3707_s1 + $0x460] sm:$0xff]  }
  0x28   :  { %2571 = vmatprep.subr.bf16.mxu0 %v2849_v57  ;;  %v2903_v57 = vld [vmem:[%s3707_s1 + $0x2f8] sm:$0xff]  }
  0x29   :  { %2592 = vmatpush3.bf16.msra.mxu1 %v2848_v58  ;;  %v2902_v58 = vld [vmem:[%s3707_s1 + $0x238] sm:$0xff]  }
  0x2a   :  { %2593 = vmatprep.subr.bf16.mxu1 %v2851_v59  ;;  %v519_v59 = vcombine.high %v509_v55, %v509_v55 }
  0x2b   :  { %2572 = vmatpush3.bf16.msra.mxu0 %v2850_v60  ;;  %v495_v60 = vrot.slane %v479_v47, %v3160_v41  ;;  %v2950_v47 = vld [vmem:[%s3707_s1 + $0x458] sm:$0xff]  }
  0x2c   :  { %2573 = vmatprep.subr.bf16.mxu0 %v2853_v61  ;;  %v2905_v61 = vld [vmem:[%s3707_s1 + $0x340] sm:$0xff]  }
  0x2d   :  { %2594 = vmatpush3.bf16.msra.mxu1 %v2852_v62  ;;  %v2904_v62 = vld [vmem:[%s3707_s1 + $0x2b8] sm:$0xff]  }
  0x2e   :  { %2595 = vmatprep.subr.bf16.mxu1 %v2855_v63  ;;  %v516_v63 = vrot.slane %v488_v56, %v3160_v41  ;;  %v2957_v56 = vld [vmem:[%s3707_s1 + $0x4a0] sm:$0xff]  }
  0x2f   :  { %2574 = vmatpush3.bf16.msra.mxu0 %v2854_v0  ;;  %v2907_v0 = vld [vmem:[%s3707_s1 + $0x3c0] sm:$0xff]  }
  0x30   :  { %2575 = vmatprep.subr.bf16.mxu0 %v2857_v1  ;;  %v2906_v1 = vld [vmem:[%s3707_s1 + $0x300] sm:$0xff]  }
  0x31   :  { %2596 = vmatpush3.bf16.msra.mxu1 %v2856_v2  ;;  %v517_v2 = vcombine.high %v495_v60, %v495_v60 }
  0x32   :  { %2597 = vmatprep.subr.bf16.mxu1 %v2859_v3  ;;  %v2909_v3 = vld [vmem:[%s3707_s1 + $0x348] sm:$0xff]  }
  0x33   :  { %2576 = vmatpush3.bf16.msra.mxu0 %v2858_v4  ;;  %v2908_v4 = vld [vmem:[%s3707_s1 + $0x380] sm:$0xff]  }
  0x34   :  { %2577 = vmatprep.subr.bf16.mxu0 %v2861_v5  ;;  %v520_v5 = vcombine.high %v516_v63, %v516_v63 }
  0x35   :  { %2598 = vmatpush3.bf16.msra.mxu1 %v2860_v6  ;;  %v2911_v6 = vld [vmem:[%s3707_s1 + $0x3c8] sm:$0xff]  }
  0x36   :  { %2599 = vmatprep.subr.bf16.mxu1 %v2863_v7  ;;  %v2910_v7 = vld [vmem:[%s3707_s1 + $0x308] sm:$0xff]  }
  0x37   :  { %2578 = vmatpush3.bf16.msra.mxu0 %v2862_v8  ;;  %v2913_v8 = vld [vmem:[%s3707_s1 + $0x350] sm:$0xff]  }
  0x38   :  { %2579 = vmatprep.subr.bf16.mxu0 %v2865_v9  ;;  %v2912_v9 = vld [vmem:[%s3707_s1 + $0x388] sm:$0xff]  }
  0x39   :  { %2600 = vmatpush3.bf16.msra.mxu1 %v2864_v10  ;;  %v2915_v10 = vld [vmem:[%s3707_s1 + $0x3d0] sm:$0xff]  }
  0x3a   :  { %2601 = vmatprep.subr.bf16.mxu1 %v2867_v11  ;;  %v2914_v11 = vld [vmem:[%s3707_s1 + $0x310] sm:$0xff]  }
  0x3b   :  { %2580 = vmatpush3.bf16.msra.mxu0 %v2866_v12  ;;  %v2917_v12 = vld [vmem:[%s3707_s1 + $0x358] sm:$0xff]  }
  0x3c   :  { %2581 = vmatprep.subr.bf16.mxu0 %v2869_v13  ;;  %v2916_v13 = vld [vmem:[%s3707_s1 + $0x390] sm:$0xff]  }
  0x3d   :  { %2602 = vmatpush3.bf16.msra.mxu1 %v2868_v14  ;;  %v2919_v14 = vld [vmem:[%s3707_s1 + $0x3d8] sm:$0xff]  }
  0x3e   :  { %2603 = vmatprep.subr.bf16.mxu1 %v2871_v15  ;;  %v2918_v15 = vld [vmem:[%s3707_s1 + $0x318] sm:$0xff]  }
  0x3f   :  { %2582 = vmatpush3.bf16.msra.mxu0 %v2870_v16  ;;  %v2921_v16 = vld [vmem:[%s3707_s1 + $0x360] sm:$0xff]  }
  0x40   :  { %2611 = vmatprep.subr.bf16.mxu0 %v2873_v18  ;;  %v2923_v18 = vld [vmem:[%s3707_s1 + $0x3e0] sm:$0xff]  }
  0x41   :  { %2604 = vmatpush3.bf16.msra.mxu1 %v2872_v19  ;;  %v2922_v19 = vld [vmem:[%s3707_s1 + $0x320] sm:$0xff]  }
  0x42   :  { %1901 = vmatmul.mubr.bf16.vlgmr.msra.gmra.mrb[4].mxu0 %v453_v17  ;;  %2633 = vmatprep.subr.bf16.mxu1 %v2875_v20  ;;  %v2920_v17 = vld [vmem:[%s3707_s1 + $0x398] sm:$0xff]   ;;  %v2925_v20 = vld [vmem:[%s3707_s1 + $0x368] sm:$0xff]  }
  0x43   :  { %2612 = vmatpush3.bf16.msra.mxu0 %v2874_v21  ;;  %1980 = vmatprep.mubr.bf16.mxu0 %v509_v55  ;;  %v2924_v21 = vld [vmem:[%s3707_s1 + $0x3a0] sm:$0xff]   ;;  %v2958_v55 = vld [vmem:[%s3707_s1 + $0x468] sm:$0xff]  }
  0x44   :  { %1941 = vmatmul.mubr.bf16.vlgmr.msra.gmra.mrb[4].mxu1 %v469_v22  ;;  %2613 = vmatprep.subr.bf16.mxu0 %v2877_v23  ;;  %v2927_v22 = vld [vmem:[%s3707_s1 + $0x3e8] sm:$0xff]  }
  0x45   :  { %2634 = vmatpush3.bf16.msra.mxu1 %v2876_v24  ;;  %2020 = vmatprep.mubr.bf16.mxu1 %v519_v59  ;;  %v2926_v23 = vld [vmem:[%s3707_s1 + $0x328] sm:$0xff]   ;;  %v2929_v24 = vld [vmem:[%s3707_s1 + $0x370] sm:$0xff]  }
  0x46   :  { %2635 = vmatprep.subr.bf16.mxu1 %v2879_v25  ;;  %v2928_v25 = vld [vmem:[%s3707_s1 + $0x3a8] sm:$0xff]   ;;  %v2962_v59 = vld [vmem:[%s3707_s1 + $0x470] sm:$0xff]  }
  0x47   :  { %2614 = vmatpush3.bf16.msra.mxu0 %v2878_v26  ;;  %v2931_v26 = vld [vmem:[%s3707_s1 + $0x3f0] sm:$0xff]  }
  0x48   :  { %2615 = vmatprep.subr.bf16.mxu0 %v2881_v27  ;;  %v2930_v27 = vld [vmem:[%s3707_s1 + $0x330] sm:$0xff]  }
  0x49   :  { %2636 = vmatpush3.bf16.msra.mxu1 %v2880_v28  ;;  %v2933_v28 = vld [vmem:[%s3707_s1 + $0x378] sm:$0xff]  }
  0x4a   :  { %2637 = vmatprep.subr.bf16.mxu1 %v2883_v29  ;;  %v2932_v29 = vld [vmem:[%s3707_s1 + $0x3b0] sm:$0xff]  }
  0x4b   :  { %2616 = vmatpush3.bf16.msra.mxu0 %v2882_v30  ;;  %v2935_v30 = vld [vmem:[%s3707_s1 + $0x3f8] sm:$0xff]  }
  0x4c   :  { %2617 = vmatprep.subr.bf16.mxu0 %v2885_v31  ;;  %v2934_v31 = vld [vmem:[%s3707_s1 + $0x338] sm:$0xff]  }
  0x4d   :  { %2638 = vmatpush3.bf16.msra.mxu1 %v2884_v32  ;;  %v502_v32 = vrot.slane %v3349_v52, %v3160_v41  ;;  %v2953_v52 = vld [vmem:[%s3707_s1 + $0x498] sm:$0xff]  }
  0x4e   :  { %2639 = vmatprep.subr.bf16.mxu1 %v2887_v33  ;;  %v2938_v33 = vld [vmem:[%s3707_s1 + $0x440] sm:$0xff]  }
  0x4f   :  { %2618 = vmatpush3.bf16.msra.mxu0 %v2886_v34  ;;  %v2937_v34 = vld [vmem:[%s3707_s1 + $0x3b8] sm:$0xff]  }
  0x50   :  { %2619 = vmatprep.subr.bf16.mxu0 %v2889_v35  ;;  %v2940_v35 = vld [vmem:[%s3707_s1 + $0x4c0] sm:$0xff]  }
  0x51   :  { %2640 = vmatpush3.bf16.msra.mxu1 %v2888_v36  ;;  %v2939_v36 = vld [vmem:[%s3707_s1 + $0x400] sm:$0xff]  }
  0x52   :  { %2641 = vmatprep.subr.bf16.mxu1 %v2891_v37  ;;  %v518_v37 = vcombine.high %v502_v32, %v502_v32 }
  0x53   :  { %2620 = vmatpush3.bf16.msra.mxu0 %v2890_v38  ;;  %v2942_v38 = vld [vmem:[%s3707_s1 + $0x448] sm:$0xff]  }
  0x54   :  { %2621 = vmatprep.subr.bf16.mxu0 %v2893_v39  ;;  %v2941_v39 = vld [vmem:[%s3707_s1 + $0x480] sm:$0xff]  }
  0x55   :  { %2642 = vmatpush3.bf16.msra.mxu1 %v2892_v40  ;;  %v2944_v40 = vld [vmem:[%s3707_s1 + $0x4c8] sm:$0xff]  }
  0x56   :  { %2643 = vmatprep.subr.bf16.mxu1 %v2895_v42  ;;  %v2943_v42 = vld [vmem:[%s3707_s1 + $0x408] sm:$0xff]  }
  0x57   :  { %2622 = vmatpush3.bf16.msra.mxu0 %v2894_v43  ;;  %v2946_v43 = vld [vmem:[%s3707_s1 + $0x450] sm:$0xff]  }
  0x58   :  { %2623 = vmatprep.subr.bf16.mxu0 %v2897_v44  ;;  %v2945_v44 = vld [vmem:[%s3707_s1 + $0x488] sm:$0xff]  }
  0x59   :  { %2644 = vmatpush3.bf16.msra.mxu1 %v2896_v46  ;;  %v2947_v46 = vld [vmem:[%s3707_s1 + $0x410] sm:$0xff]  }
  0x5a   :  { %2645 = vmatprep.subr.bf16.mxu1 %v2899_v49  ;;  %v2952_v49 = vld [vmem:[%s3707_s1 + $0x4d8] sm:$0xff]  }
  0x5b   :  { %2624 = vmatpush3.bf16.msra.mxu0 %v2898_v50  ;;  %v2951_v50 = vld [vmem:[%s3707_s1 + $0x418] sm:$0xff]  }
  0x5c   :  { %2625 = vmatprep.subr.bf16.mxu0 %v2901_v53  ;;  %v2956_v53 = vld [vmem:[%s3707_s1 + $0x4e0] sm:$0xff]  }
  0x5d   :  { %2646 = vmatpush3.bf16.msra.mxu1 %v2900_v54  ;;  %v2955_v54 = vld [vmem:[%s3707_s1 + $0x420] sm:$0xff]  }
  0x5e   :  { %2647 = vmatprep.subr.bf16.mxu1 %v2903_v57  ;;  %v2960_v57 = vld [vmem:[%s3707_s1 + $0x4e8] sm:$0xff]  }
  0x5f   :  { %2626 = vmatpush3.bf16.msra.mxu0 %v2902_v58  ;;  %v2959_v58 = vld [vmem:[%s3707_s1 + $0x428] sm:$0xff]  }
  0x60   :  { %2655 = vmatprep.subr.bf16.mxu0 %v2905_v61  ;;  %v2961_v61 = vld [vmem:[%s3707_s1 + $0x4a8] sm:$0xff]  }
  0x61   :  { %2648 = vmatpush3.bf16.msra.mxu1 %v2904_v62 }
  0x62   :  { %1981 = vmatmul.mubr.bf16.vlgmr.msra.gmra.mrb[8].mxu0 %v495_v60  ;;  %2677 = vmatprep.subr.bf16.mxu1 %v2907_v0  ;;  %v18_v60 = vld [vmem:[%s3706_s0 + $0x10] sm:$0xff] }
  0x63   :  { %2656 = vmatpush3.bf16.msra.mxu0 %v2906_v1  ;;  %2060 = vmatprep.mubr.bf16.mxu0 %v516_v63  ;;  %v528_v62 = vrot.slane %v18_v60, %v3160_v41  ;;  %v521_v63 = vcombine.high %v18_v60, %v18_v60  ;;  %v2964_v0 = vld [vmem:[%s3707_s1 + $0x4f0] sm:$0xff]  }
  0x64   :  { %2021 = vmatmul.mubr.bf16.vlgmr.msra.gmra.mrb[8].mxu1 %v517_v2  ;;  %2657 = vmatprep.subr.bf16.mxu0 %v2909_v3  ;;  %v2963_v1 = vld [vmem:[%s3707_s1 + $0x430] sm:$0xff]  }
  0x65   :  { %2678 = vmatpush3.bf16.msra.mxu1 %v2908_v4  ;;  %2100 = vmatprep.mubr.bf16.mxu1 %v520_v5  ;;  %v536_v2 = vcombine.high %v528_v62, %v528_v62  ;;  %v3555_v3 = vrot.slane %v521_v63, %v3160_v41  ;;  %v2966_v4 = vld [vmem:[%s3707_s1 + $0x478] sm:$0xff]   ;;  %v2965_v5 = vld [vmem:[%s3707_s1 + $0x4b0] sm:$0xff]  }
  0x66   :  { %2679 = vmatprep.subr.bf16.mxu1 %v2911_v6 }
  0x67   :  { %2658 = vmatpush3.bf16.msra.mxu0 %v2910_v7  ;;  %v558_v6 = vrot.slane %v536_v2, %v3160_v41  ;;  %v537_v7 = vcombine.high %v3555_v3, %v3555_v3 }
  0x68   :  { %2659 = vmatprep.subr.bf16.mxu0 %v2913_v8  ;;  %v2968_v8 = vld [vmem:[%s3707_s1 + $0x4f8] sm:$0xff]  }
  0x69   :  { %2680 = vmatpush3.bf16.msra.mxu1 %v2912_v9  ;;  %v2967_v9 = vld [vmem:[%s3707_s1 + $0x438] sm:$0xff]  }
  0x6a   :  { %2681 = vmatprep.subr.bf16.mxu1 %v2915_v10  ;;  %v568_v10 = vcombine.high %v558_v6, %v558_v6 }
  0x6b   :  { %2660 = vmatpush3.bf16.msra.mxu0 %v2914_v11  ;;  %v544_v11 = vrot.slane %v528_v62, %v3160_v41 }
  0x6c   :  { %2661 = vmatprep.subr.bf16.mxu0 %v2917_v12  ;;  %v2970_v12 = vld [vmem:[%s3707_s1 + $0x540] sm:$0xff]  }
  0x6d   :  { %2682 = vmatpush3.bf16.msra.mxu1 %v2916_v13  ;;  %v2969_v13 = vld [vmem:[%s3707_s1 + $0x4b8] sm:$0xff]  }
  0x6e   :  { %2683 = vmatprep.subr.bf16.mxu1 %v2919_v14  ;;  %v565_v14 = vrot.slane %v537_v7, %v3160_v41 }
  0x6f   :  { %2662 = vmatpush3.bf16.msra.mxu0 %v2918_v15  ;;  %v2972_v15 = vld [vmem:[%s3707_s1 + $0x5c0] sm:$0xff]  }
  0x70   :  { %2663 = vmatprep.subr.bf16.mxu0 %v2921_v16  ;;  %v2971_v16 = vld [vmem:[%s3707_s1 + $0x500] sm:$0xff]  }
  0x71   :  { %2684 = vmatpush3.bf16.msra.mxu1 %v2920_v17  ;;  %v566_v17 = vcombine.high %v544_v11, %v544_v11 }
  0x72   :  { %2685 = vmatprep.subr.bf16.mxu1 %v2923_v18  ;;  %v2974_v18 = vld [vmem:[%s3707_s1 + $0x548] sm:$0xff]  }
  0x73   :  { %2664 = vmatpush3.bf16.msra.mxu0 %v2922_v19  ;;  %v2973_v19 = vld [vmem:[%s3707_s1 + $0x580] sm:$0xff]  }
  0x74   :  { %2665 = vmatprep.subr.bf16.mxu0 %v2925_v20  ;;  %v569_v20 = vcombine.high %v565_v14, %v565_v14 }
  0x75   :  { %2686 = vmatpush3.bf16.msra.mxu1 %v2924_v21  ;;  %v2976_v21 = vld [vmem:[%s3707_s1 + $0x5c8] sm:$0xff]  }
  0x76   :  { %2687 = vmatprep.subr.bf16.mxu1 %v2927_v22  ;;  %v2975_v22 = vld [vmem:[%s3707_s1 + $0x508] sm:$0xff]  }
  0x77   :  { %2666 = vmatpush3.bf16.msra.mxu0 %v2926_v23  ;;  %v2978_v23 = vld [vmem:[%s3707_s1 + $0x550] sm:$0xff]  }
  0x78   :  { %2667 = vmatprep.subr.bf16.mxu0 %v2929_v24  ;;  %v2977_v24 = vld [vmem:[%s3707_s1 + $0x588] sm:$0xff]  }
  0x79   :  { %2688 = vmatpush3.bf16.msra.mxu1 %v2928_v25  ;;  %v2980_v25 = vld [vmem:[%s3707_s1 + $0x5d0] sm:$0xff]  }
  0x7a   :  { %2689 = vmatprep.subr.bf16.mxu1 %v2931_v26  ;;  %v2979_v26 = vld [vmem:[%s3707_s1 + $0x510] sm:$0xff]  }
  0x7b   :  { %2668 = vmatpush3.bf16.msra.mxu0 %v2930_v27  ;;  %v2982_v27 = vld [vmem:[%s3707_s1 + $0x558] sm:$0xff]  }
  0x7c   :  { %2669 = vmatprep.subr.bf16.mxu0 %v2933_v28  ;;  %v2981_v28 = vld [vmem:[%s3707_s1 + $0x590] sm:$0xff]  }
  0x7d   :  { %2690 = vmatpush3.bf16.msra.mxu1 %v2932_v29  ;;  %v2984_v29 = vld [vmem:[%s3707_s1 + $0x5d8] sm:$0xff]  }
  0x7e   :  { %2691 = vmatprep.subr.bf16.mxu1 %v2935_v30  ;;  %v2983_v30 = vld [vmem:[%s3707_s1 + $0x518] sm:$0xff]  }
  0x7f   :  { %2670 = vmatpush3.bf16.msra.mxu0 %v2934_v31  ;;  %v2986_v31 = vld [vmem:[%s3707_s1 + $0x560] sm:$0xff]  }
  0x80   :  { %2699 = vmatprep.subr.bf16.mxu0 %v2938_v33  ;;  %v2988_v33 = vld [vmem:[%s3707_s1 + $0x5e0] sm:$0xff]  }
  0x81   :  { %2692 = vmatpush3.bf16.msra.mxu1 %v2937_v34  ;;  %v2987_v34 = vld [vmem:[%s3707_s1 + $0x520] sm:$0xff]  }
  0x82   :  { %2061 = vmatmul.mubr.bf16.vlgmr.msra.gmra.mrb[12].mxu0 %v502_v32  ;;  %2721 = vmatprep.subr.bf16.mxu1 %v2940_v35  ;;  %v2985_v32 = vld [vmem:[%s3707_s1 + $0x598] sm:$0xff]   ;;  %v2990_v35 = vld [vmem:[%s3707_s1 + $0x568] sm:$0xff]  }
  0x83   :  { %2700 = vmatpush3.bf16.msra.mxu0 %v2939_v36  ;;  %2140 = vmatprep.mubr.bf16.mxu0 %v558_v6  ;;  %v2989_v36 = vld [vmem:[%s3707_s1 + $0x5a0] sm:$0xff]  }
  0x84   :  { %2101 = vmatmul.mubr.bf16.vlgmr.msra.gmra.mrb[12].mxu1 %v518_v37  ;;  %2701 = vmatprep.subr.bf16.mxu0 %v2942_v38  ;;  %v2992_v37 = vld [vmem:[%s3707_s1 + $0x5e8] sm:$0xff]  }
  0x85   :  { %2722 = vmatpush3.bf16.msra.mxu1 %v2941_v39  ;;  %2180 = vmatprep.mubr.bf16.mxu1 %v568_v10  ;;  %v2991_v38 = vld [vmem:[%s3707_s1 + $0x528] sm:$0xff]   ;;  %v2994_v39 = vld [vmem:[%s3707_s1 + $0x570] sm:$0xff]  }
  0x86   :  { %2723 = vmatprep.subr.bf16.mxu1 %v2944_v40  ;;  %v2993_v40 = vld [vmem:[%s3707_s1 + $0x5a8] sm:$0xff]  }
  0x87   :  { %2702 = vmatpush3.bf16.msra.mxu0 %v2943_v42  ;;  %v2996_v42 = vld [vmem:[%s3707_s1 + $0x5f0] sm:$0xff]  }
  0x88   :  { %2703 = vmatprep.subr.bf16.mxu0 %v2946_v43  ;;  %v2995_v43 = vld [vmem:[%s3707_s1 + $0x530] sm:$0xff]  }
  0x89   :  { %2724 = vmatpush3.bf16.msra.mxu1 %v2945_v44  ;;  %v2998_v44 = vld [vmem:[%s3707_s1 + $0x578] sm:$0xff]  }
  0x8a   :  { %2725 = vmatprep.subr.bf16.mxu1 %v2948_v45  ;;  %v2997_v45 = vld [vmem:[%s3707_s1 + $0x5b0] sm:$0xff]  }
  0x8b   :  { %2704 = vmatpush3.bf16.msra.mxu0 %v2947_v46  ;;  %v3000_v46 = vld [vmem:[%s3707_s1 + $0x5f8] sm:$0xff]  }
  0x8c   :  { %2705 = vmatprep.subr.bf16.mxu0 %v2950_v47  ;;  %v2999_v47 = vld [vmem:[%s3707_s1 + $0x538] sm:$0xff]  }
  0x8d   :  { %2726 = vmatpush3.bf16.msra.mxu1 %v2949_v48 }
  0x8e   :  { %2727 = vmatprep.subr.bf16.mxu1 %v2952_v49 }
  0x8f   :  { %2706 = vmatpush3.bf16.msra.mxu0 %v2951_v50 }
  0x90   :  { %2707 = vmatprep.subr.bf16.mxu0 %v2954_v51 }
  0x91   :  { %2728 = vmatpush3.bf16.msra.mxu1 %v2953_v52 }
  0x92   :  { %2729 = vmatprep.subr.bf16.mxu1 %v2956_v53 }
  0x93   :  { %2708 = vmatpush3.bf16.msra.mxu0 %v2955_v54 }
  0x94   :  { %2709 = vmatprep.subr.bf16.mxu0 %v2958_v55 }
  0x95   :  { %2730 = vmatpush3.bf16.msra.mxu1 %v2957_v56 }
  0x96   :  { %2731 = vmatprep.subr.bf16.mxu1 %v2960_v57 }
  0x97   :  { %2710 = vmatpush3.bf16.msra.mxu0 %v2959_v58 }
  0x98   :  { %2711 = vmatprep.subr.bf16.mxu0 %v2962_v59 }
  0x99   :  { %2732 = vmatpush3.bf16.msra.mxu1 %v2961_v61 }
  0x9a   :  { %2733 = vmatprep.subr.bf16.mxu1 %v2964_v0 }
  0x9b   :  { %2712 = vmatpush3.bf16.msra.mxu0 %v2963_v1 }
  0x9c   :  { %2713 = vmatprep.subr.bf16.mxu0 %v2966_v4 }
  0x9d   :  { %2734 = vmatpush3.bf16.msra.mxu1 %v2965_v5 }
  0x9e   :  { %2735 = vmatprep.subr.bf16.mxu1 %v2968_v8 }
  0x9f   :  { %2714 = vmatpush3.bf16.msra.mxu0 %v2967_v9 }
  0xa0   :  { %2743 = vmatprep.subr.bf16.mxu0 %v2970_v12 }
  0xa1   :  { %2736 = vmatpush3.bf16.msra.mxu1 %v2969_v13 }
  0xa2   :  { %2141 = vmatmul.mubr.bf16.vlgmr.msra.gmra.mrb[16].mxu0 %v544_v11  ;;  %2765 = vmatprep.subr.bf16.mxu1 %v2972_v15 }
  0xa3   :  { %2744 = vmatpush3.bf16.msra.mxu0 %v2971_v16  ;;  %2220 = vmatprep.mubr.bf16.mxu0 %v565_v14 }
  0xa4   :  { %2181 = vmatmul.mubr.bf16.vlgmr.msra.gmra.mrb[16].mxu1 %v566_v17  ;;  %2745 = vmatprep.subr.bf16.mxu0 %v2974_v18 }
  0xa5   :  { %2766 = vmatpush3.bf16.msra.mxu1 %v2973_v19  ;;  %2260 = vmatprep.mubr.bf16.mxu1 %v569_v20 }
  0xa6   :  { %2767 = vmatprep.subr.bf16.mxu1 %v2976_v21 }
  0xa7   :  { %2746 = vmatpush3.bf16.msra.mxu0 %v2975_v22 }
  0xa8   :  { %2747 = vmatprep.subr.bf16.mxu0 %v2978_v23 }
  0xa9   :  { %2768 = vmatpush3.bf16.msra.mxu1 %v2977_v24 }
  0xaa   :  { %2769 = vmatprep.subr.bf16.mxu1 %v2980_v25 }
  0xab   :  { %2748 = vmatpush3.bf16.msra.mxu0 %v2979_v26 }
  0xac   :  { %2749 = vmatprep.subr.bf16.mxu0 %v2982_v27 }
  0xad   :  { %2770 = vmatpush3.bf16.msra.mxu1 %v2981_v28 }
  0xae   :  { %2771 = vmatprep.subr.bf16.mxu1 %v2984_v29 }
  0xaf   :  { %2750 = vmatpush3.bf16.msra.mxu0 %v2983_v30 }
  0xb0   :  { %2751 = vmatprep.subr.bf16.mxu0 %v2986_v31 }
  0xb1   :  { %2772 = vmatpush3.bf16.msra.mxu1 %v2985_v32 }
  0xb2   :  { %2773 = vmatprep.subr.bf16.mxu1 %v2988_v33 }
  0xb3   :  { %2752 = vmatpush3.bf16.msra.mxu0 %v2987_v34 }
  0xb4   :  { %2753 = vmatprep.subr.bf16.mxu0 %v2990_v35 }
  0xb5   :  { %2774 = vmatpush3.bf16.msra.mxu1 %v2989_v36 }
  0xb6   :  { %2775 = vmatprep.subr.bf16.mxu1 %v2992_v37 }
  0xb7   :  { %2754 = vmatpush3.bf16.msra.mxu0 %v2991_v38 }
  0xb8   :  { %2755 = vmatprep.subr.bf16.mxu0 %v2994_v39 }
  0xb9   :  { %2776 = vmatpush3.bf16.msra.mxu1 %v2993_v40 }
  0xba   :  { %2777 = vmatprep.subr.bf16.mxu1 %v2996_v42 }
  0xbb   :  { %2756 = vmatpush3.bf16.msra.mxu0 %v2995_v43 }
  0xbc   :  { %8 = vsyncpa [#allocation3], 0  ;;  %2757 = vmatprep.subr.bf16.mxu0 %v2998_v44  ;;  %v551_v48 = vrot.slane %v3555_v3, %v3160_v41  ;;  %v3002_v49 = vld [vmem:[%s3707_s1 + $0x5b8] sm:$0xff]   ;;  %v3003_v50 = vld [vmem:[%s3707_s1 + $0x600] sm:$0xff]   ;;  %v3032_v51 = vmov 0.0   ;;  %vm3033_vm0 = vmmov 0  }
  0xbd   :  { %2778 = vmatpush3.bf16.msra.mxu1 %v2997_v45  ;;  %v3004_v53 = vld [vmem:[%s3707_s1 + $0x608] sm:$0xff]   ;;  %v3005_v54 = vld [vmem:[%s3707_s1 + $0x610] sm:$0xff]   ;;  %v3006_v55 = vld [vmem:[%s3707_s1 + $0x618] sm:$0xff]   ;;  %vm1784_vm1 = vcmask 523264   ;;  %vm2308_vm2 = vcmask 66560  }
  0xbe   :  { %2779 = vmatprep.subr.bf16.mxu1 %v3000_v46  ;;  %v567_v52 = vcombine.high %v551_v48, %v551_v48  ;;  %v2325_v56 = vld.sshfl [vmem:[%s3706_s0 + $0x18] sm:$0x1 pattern:$0x75316420]  ;;  %v2324_v59 = vld [vmem:[%s3708_s2] ss:$0 sm:$0xff] }
  0xbf   :  { %2758 = vmatpush3.bf16.msra.mxu0 %v2999_v47  ;;  %v583_v57 = vrot.slane %v2325_v56, %v3160_v41  ;;  %s3034_s0 = smov [#allocation2]  }
  0xc0   :  { %2792 = vmatprep.subr.bf16.mxu0 %v3032_v51  ;;  %s2316_s1 = sshll.u32 %s3034_s0, 4  ;;  %s2317_s1 = int_to_ptr.vmem [resolvable:$true] %s2316_s1 }
  0xc1   :  { %2780 = vmatpush3.bf16.msra.mxu1 %v3002_v49  ;;  %s3007_s2 = scalar_lea.vmem %s2317_s1, 32  ;;  %p3012_p1 = scmp.lt.s32.totalorder %s2317_s1, %s2317_s1 }
  0xc2   :  { %2221 = vmatmul.mubr.bf16.vlgmr.msra.gmra.mrb[20].mxu0 %v551_v48  ;;  %p3008_p0 = scmp.ne.s32.totalorder %s2317_s1, %s3007_s2  ;;  %p3013_p2 = scmp.lt.s32.totalorder %s3007_s2, %s3007_s2 }
  0xc3   :  { %2793 = vmatpush3.bf16.msra.mxu0 %v3003_v50  ;;  %2800 = vmatprep.mubr.msk.bf16.mxu0 %vm3033_vm0, %v3032_v51 }
  0xc4   :  { %2261 = vmatmul.mubr.bf16.vlgmr.msra.gmra.mrb[20].mxu1 %v567_v52  ;;  %2794 = vmatprep.subr.bf16.mxu0 %v3032_v51  ;;  %p3014_p3 = por %p3013_p2, %p3012_p1 }
  0xc6   :  { %p3015_p4 = pnand %p3014_p3, %p3008_p0 }
  0xc7   :  { %2795 = vmatpush3.bf16.msra.mxu0 %v3004_v53 }
  0xc8   :  { %2796 = vmatprep.subr.bf16.mxu0 %v3032_v51 }
  0xcb   :  { %2797 = vmatpush3.bf16.msra.mxu0 %v3005_v54 }
  0xcc   :  { %2798 = vmatprep.subr.bf16.mxu0 %v3032_v51 }
  0xcf   :  { %2799 = vmatpush3.bf16.msra.mxu0 %v3006_v55 }
  0xd2   :  { %2801 = vmatmul.mubr.msk.bf16.vlgmr.msra.gmra.mrb[24].mxu0 %vm1784_vm1, %v583_v57 }
  0xf5   :  { %v2539_v58 = vpop.f32.mrb[0].mxu0 }
  0xf6   :  { %v2540_v60 = vpop.f32.mrb[1].mxu0 }
  0xf7   :  { %v2541_v61 = vadd.f32 %v2540_v60, %v2539_v58  ;;  %v2542_v62 = vpop.f32.mrb[2].mxu0  ;;  %v2561_v63 = vpop.f32.mrb[0].mxu1 }
  0xf8   :  { %v2543_v0 = vpop.f32.mrb[3].mxu0  ;;  %v2562_v1 = vpop.f32.mrb[1].mxu1 }
  0xf9   :  { %v1823_v2 = vadd.f32 %v2541_v61, %v2324_v59  ;;  %v2563_v3 = vadd.f32 %v2562_v1, %v2561_v63  ;;  %v2564_v4 = vpop.f32.mrb[2].mxu1 }
  0xfa   :  { %v2565_v5 = vpop.f32.mrb[3].mxu1 }
  0xfb   :  { %v1863_v6 = vadd.f32 %v2563_v3, %v1823_v2 }
 0x115   :  { %v2583_v41 = vpop.f32.mrb[4].mxu0 }
 0x116   :  { %v2584_v7 = vpop.f32.mrb[5].mxu0 }
 0x117   :  { %v2585_v8 = vadd.f32 %v2584_v7, %v2583_v41  ;;  %v2586_v9 = vpop.f32.mrb[6].mxu0  ;;  %v2605_v10 = vpop.f32.mrb[4].mxu1 }
 0x118   :  { %v2587_v11 = vpop.f32.mrb[7].mxu0  ;;  %v2606_v12 = vpop.f32.mrb[5].mxu1 }
 0x119   :  { %v1903_v13 = vadd.f32 %v2585_v8, %v1863_v6  ;;  %v2607_v14 = vadd.f32 %v2606_v12, %v2605_v10  ;;  %v2608_v15 = vpop.f32.mrb[6].mxu1 }
 0x11a   :  { %v2609_v16 = vpop.f32.mrb[7].mxu1 }
 0x11b   :  { %v1943_v17 = vadd.f32 %v2607_v14, %v1903_v13 }
 0x135   :  { %v2627_v18 = vpop.f32.mrb[8].mxu0 }
 0x136   :  { %v2628_v19 = vpop.f32.mrb[9].mxu0 }
 0x137   :  { %v2629_v20 = vadd.f32 %v2628_v19, %v2627_v18  ;;  %v2630_v21 = vpop.f32.mrb[10].mxu0  ;;  %v2649_v22 = vpop.f32.mrb[8].mxu1 }
 0x138   :  { %v2631_v23 = vpop.f32.mrb[11].mxu0  ;;  %v2650_v24 = vpop.f32.mrb[9].mxu1 }
 0x139   :  { %v1983_v25 = vadd.f32 %v2629_v20, %v1943_v17  ;;  %v2651_v26 = vadd.f32 %v2650_v24, %v2649_v22  ;;  %v2652_v27 = vpop.f32.mrb[10].mxu1 }
 0x13a   :  { %v2653_v28 = vpop.f32.mrb[11].mxu1 }
 0x13b   :  { %v2023_v29 = vadd.f32 %v2651_v26, %v1983_v25 }
 0x155   :  { %v2671_v30 = vpop.f32.mrb[12].mxu0 }
 0x156   :  { %v2672_v31 = vpop.f32.mrb[13].mxu0 }
 0x157   :  { %v2673_v32 = vadd.f32 %v2672_v31, %v2671_v30  ;;  %v2674_v33 = vpop.f32.mrb[14].mxu0  ;;  %v2693_v34 = vpop.f32.mrb[12].mxu1 }
 0x158   :  { %v2675_v35 = vpop.f32.mrb[15].mxu0  ;;  %v2694_v36 = vpop.f32.mrb[13].mxu1 }
 0x159   :  { %v2063_v37 = vadd.f32 %v2673_v32, %v2023_v29  ;;  %v2695_v38 = vadd.f32 %v2694_v36, %v2693_v34  ;;  %v2696_v39 = vpop.f32.mrb[14].mxu1 }
 0x15a   :  { %v2697_v40 = vpop.f32.mrb[15].mxu1 }
 0x15b   :  { %v2103_v42 = vadd.f32 %v2695_v38, %v2063_v37 }
 0x175   :  { %v2715_v43 = vpop.f32.mrb[16].mxu0 }
 0x176   :  { %v2716_v44 = vpop.f32.mrb[17].mxu0 }
 0x177   :  { %v2717_v45 = vadd.f32 %v2716_v44, %v2715_v43  ;;  %v2718_v46 = vpop.f32.mrb[18].mxu0  ;;  %v2737_v47 = vpop.f32.mrb[16].mxu1 }
 0x178   :  { %v2719_v48 = vpop.f32.mrb[19].mxu0  ;;  %v2738_v49 = vpop.f32.mrb[17].mxu1 }
 0x179   :  { %v2143_v50 = vadd.f32 %v2717_v45, %v2103_v42  ;;  %v2739_v51 = vadd.f32 %v2738_v49, %v2737_v47  ;;  %v2740_v52 = vpop.f32.mrb[18].mxu1 }
 0x17a   :  { %v2741_v53 = vpop.f32.mrb[19].mxu1 }
 0x17b   :  { %v2183_v54 = vadd.f32 %v2739_v51, %v2143_v50 }
 0x195   :  { %v2759_v55 = vpop.f32.mrb[20].mxu0 }
 0x196   :  { %v2760_v56 = vpop.f32.mrb[21].mxu0 }
 0x197   :  { %v2761_v57 = vadd.f32 %v2760_v56, %v2759_v55  ;;  %v2762_v58 = vpop.f32.mrb[22].mxu0  ;;  %v2781_v59 = vpop.f32.mrb[20].mxu1 }
 0x198   :  { %v2763_v60 = vpop.f32.mrb[23].mxu0  ;;  %v2782_v61 = vpop.f32.mrb[21].mxu1 }
 0x199   :  { %v2223_v62 = vadd.f32 %v2761_v57, %v2183_v54  ;;  %v2783_v63 = vadd.f32 %v2782_v61, %v2781_v59  ;;  %v2784_v0 = vpop.f32.mrb[22].mxu1 }
 0x19a   :  { %v2785_v1 = vpop.f32.mrb[23].mxu1 }
 0x19b   :  { %v2263_v2 = vadd.f32 %v2783_v63, %v2223_v62 }
 0x1a5   :  { %v2302_v3 = vpop.f32.mrb[24].mxu0 }
 0x1a6   :  { %v2303_v4 = vadd.f32 %v2302_v3, %v2263_v2  ;;  %v2802_v5 = vpop.f32.mrb[25].mxu0 }
 0x1a7   :  { %v2305_v6 = vpop.f32.mrb[26].mxu0 }
 0x1a8   :  { %v2803_v41 = vpop.f32.mrb[27].mxu0  ;;  %2309 = vst.msk [vmem:[#allocation2] sm:$0x3] %vm2308_vm2, %v2303_v4 }
 0x1a9   :  { %3018 = shalt.err (!%p3015_p4)
}
 0x1aa   :  { %s3019_s11 = scalar_lea.hbm %s3709_s3, 32 }
 0x1ab   :  { %p3020_p5 = scmp.ne.s32.totalorder %s3709_s3, %s3019_s11  ;;  %p3023_p6 = scmp.lt.u32.totalorder %s3019_s11, %s3709_s3 }
 0x1ad   :  { %p3025_p7 = pnand %p3023_p6, %p3020_p5 }
 0x1af   :  { %3028 = shalt.err (!%p3025_p7)
}
 0x1b0   :  { %2319 = dma.vmem_to_hbm [thread:$0]  %s2317_s1, 32, %s3709_s3, [#allocation3]  }
 0x1b1   :  { %3029 = dma.done.wait [#allocation3], 32  }
 0x1b2   :  { %3030 = vsyncadd [#allocation3], 4294967264 }
 0x1b3   :  { %2323 = vsyncpa [#allocation3], 1 }

</bundles_post_ra>
